<compile_context>
chip_gen: v6e
topology: v6e:2x2x1
jax: 0.10.0
libtpu: 0.0.40
codegen_flags: <defaults>
</compile_context>

<pallas_src>
import jax
import jax.numpy as jnp
from jax import lax
from jax.experimental import pallas as pl
from jax.experimental.pallas import tpu as pltpu

PATCH = 16            # 64x64 image -> 4x4 = 16 patches
D_MODEL = 128         # synthetic encoder width
D_EMBED = 128         # joint CLIP embedding dim
VOCAB = 64            # synthetic token vocabulary
SEQ = 8               # synthetic text length
EPS = 1e-12           # F.normalize default eps
BATCH_TILE = 8        # one f32 sublane tile of batch rows per grid step


# ----------------------------------------------------------------------------- #
# Fused kernel: image branch + text branch, one grid step per BATCH_TILE rows
# ----------------------------------------------------------------------------- #
def _glide_clip_kernel(patches_ref, tsin_ref, tok_emb_ref,
                       w_img_ref, w_time_ref, w_txt_ref,
                       img_out_ref, txt_out_ref):
    # ---- image branch ------------------------------------------------------
    # mean_p((2x-1) @ Wpatch) @ Wproj == (2*mean_p(x) - 1) @ (Wpatch @ Wproj)
    pooled_x = 2.0 * jnp.mean(patches_ref[...], axis=1) - 1.0      # (BT, K) f32
    img = jnp.dot(pooled_x.astype(jnp.bfloat16), w_img_ref[...],
                  preferred_element_type=jnp.float32)              # (BT, E)
    img = img + jnp.dot(tsin_ref[...].astype(jnp.bfloat16), w_time_ref[...],
                        preferred_element_type=jnp.float32)
    inv_i = lax.rsqrt(jnp.maximum(jnp.sum(img * img, axis=-1, keepdims=True),
                                  EPS * EPS))
    img_out_ref[...] = img * inv_i                                 # F.normalize

    # ---- text branch ---------------------------------------------------------
    # mean_t(x @ W1) @ Wout == mean_t(x) @ (W1 @ Wout)
    pooled_t = jnp.mean(tok_emb_ref[...], axis=1)                  # (BT, D) f32
    txt = jnp.dot(pooled_t.astype(jnp.bfloat16), w_txt_ref[...],
                  preferred_element_type=jnp.float32)              # (BT, E)
    inv_t = lax.rsqrt(jnp.maximum(jnp.sum(txt * txt, axis=-1, keepdims=True),
                                  EPS * EPS))
    txt_out_ref[...] = txt * inv_t                                 # F.normalize


# ----------------------------------------------------------------------------- #
# Plain-JAX glue
# ----------------------------------------------------------------------------- #
def _extract_patches(x_nchw):
    """NCHW [B, C, H, W] -> [B, P, C*ph*pw] non-overlapping patches."""
    b, c, h, w = x_nchw.shape
    gh, gw = h // PATCH, w // PATCH
    x = x_nchw.reshape(b, c, gh, PATCH, gw, PATCH)
    x = jnp.transpose(x, (0, 2, 4, 1, 3, 5))            # B, gh, gw, C, ph, pw
    return x.reshape(b, gh * gw, c * PATCH * PATCH)


def _timestep_embedding(ts, dim, max_period=10000.0):
    half = dim // 2
    freqs = jnp.exp(-jnp.log(max_period) * jnp.arange(half, dtype=jnp.float32) / half)
    args = ts.astype(jnp.float32)[:, None] * freqs[None, :]
    return jnp.concatenate([jnp.cos(args), jnp.sin(args)], axis=-1)


def _pad_batch(x, b_pad):
    b = x.shape[0]
    if b == b_pad:
        return x
    pad = [(0, b_pad - b)] + [(0, 0)] * (x.ndim - 1)
    return jnp.pad(x, pad)


def init_params(key):
    k = jax.random.split(key, 6)
    kdim = 3 * PATCH * PATCH
    w_patch = jax.random.normal(k[0], (kdim, D_MODEL), jnp.float32) / jnp.sqrt(kdim)
    w_time = jax.random.normal(k[1], (D_MODEL, D_MODEL), jnp.float32) / jnp.sqrt(D_MODEL)
    w_proj = jax.random.normal(k[2], (D_MODEL, D_EMBED), jnp.float32) / jnp.sqrt(D_MODEL)
    tok_table = jax.random.normal(k[3], (VOCAB, D_MODEL), jnp.float32) * 0.02
    w_text1 = jax.random.normal(k[4], (D_MODEL, D_MODEL), jnp.float32) / jnp.sqrt(D_MODEL)
    w_text_out = jax.random.normal(k[5], (D_MODEL, D_EMBED), jnp.float32) / jnp.sqrt(D_MODEL)
    return dict(
        # original (unfused, f32) weights, kept for the pure-JAX reference
        w_patch=w_patch, w_time=w_time, w_proj=w_proj,
        tok_table=tok_table, w_text1=w_text1, w_text_out=w_text_out,
        # pre-fused bf16 weights used by the kernel (output projection folded in)
        w_img_fused=(w_patch @ w_proj).astype(jnp.bfloat16),
        w_time_fused=(w_time @ w_proj).astype(jnp.bfloat16),
        w_txt_fused=(w_text1 @ w_text_out).astype(jnp.bfloat16),
    )


def encode_images_and_texts(diffused, ts, tokens, params):
    """Fused optimized path: both CLIP embeddings from one pallas_call.

    diffused: [B, 3, 64, 64] in [0,1];  ts: [B] int timesteps;  tokens: [B, T] ids.
    """
    b = diffused.shape[0]
    b_pad = max(BATCH_TILE, pl.cdiv(b, BATCH_TILE) * BATCH_TILE)

    patches = _pad_batch(_extract_patches(diffused), b_pad)               # (Bp, P, K)
    tsin = _timestep_embedding(_pad_batch(ts, b_pad), D_MODEL)            # (Bp, D)
    tok_emb = _pad_batch(jnp.take(params["tok_table"], tokens, axis=0),
                         b_pad)                                           # (Bp, T, D)

    p, kdim = patches.shape[1], patches.shape[2]
    t = tok_emb.shape[1]
    grid = (b_pad // BATCH_TILE,)

    img, txt = pl.pallas_call(
        _glide_clip_kernel,
        out_shape=(jax.ShapeDtypeStruct((b_pad, D_EMBED), jnp.float32),
                   jax.ShapeDtypeStruct((b_pad, D_EMBED), jnp.float32)),
        grid=grid,
        in_specs=[
            pl.BlockSpec((BATCH_TILE, p, kdim), lambda i: (i, 0, 0)),
            pl.BlockSpec((BATCH_TILE, D_MODEL), lambda i: (i, 0)),
            pl.BlockSpec((BATCH_TILE, t, D_MODEL), lambda i: (i, 0, 0)),
            pl.BlockSpec((kdim, D_EMBED), lambda i: (0, 0)),     # weights stay resident
            pl.BlockSpec((D_MODEL, D_EMBED), lambda i: (0, 0)),
            pl.BlockSpec((D_MODEL, D_EMBED), lambda i: (0, 0)),
        ],
        out_specs=(pl.BlockSpec((BATCH_TILE, D_EMBED), lambda i: (i, 0)),
                   pl.BlockSpec((BATCH_TILE, D_EMBED), lambda i: (i, 0))),
        compiler_params=pltpu.CompilerParams(
            dimension_semantics=("parallel",)),
    )(patches, tsin, tok_emb,
      params["w_img_fused"], params["w_time_fused"], params["w_txt_fused"])

    return img[:b], txt[:b]


# API-compatible thin wrappers (production callers should use the merged entry)
def encode_images(diffused, ts, params):
    b = diffused.shape[0]
    dummy_tokens = jnp.zeros((b, SEQ), jnp.int32)
    img, _ = encode_images_and_texts(diffused, ts, dummy_tokens, params)
    return img


def encode_texts(tokens, params):
    b = tokens.shape[0]
    dummy_img = jnp.zeros((b, 3, 64, 64), jnp.float32)
    dummy_ts = jnp.zeros((b,), jnp.int32)
    _, txt = encode_images_and_texts(dummy_img, dummy_ts, tokens, params)
    return txt


# ----------------------------------------------------------------------------- #
# Pure-JAX references (original unfused structure, for correctness check)
# ----------------------------------------------------------------------------- #
def _ref_images(diffused, ts, params):
    x = _extract_patches(diffused) * 2.0 - 1.0
    h = jnp.einsum("bpk,kd->bpd", x, params["w_patch"], precision="highest")
    pooled = h.mean(1) + _timestep_embedding(ts, D_MODEL) @ params["w_time"]
    emb = pooled @ params["w_proj"]
    n = jnp.sqrt((emb ** 2).sum(-1, keepdims=True))
    return emb / jnp.maximum(n, EPS)


def _ref_texts(tokens, params):
    x = jnp.take(params["tok_table"], tokens, axis=0)
    h = jnp.einsum("btd,de->bte", x, params["w_text1"], precision="highest")
    emb = h.mean(1) @ params["w_text_out"]
    n = jnp.sqrt((emb ** 2).sum(-1, keepdims=True))
    return emb / jnp.maximum(n, EPS)


if __name__ == "__main__":
    key = jax.random.PRNGKey(0)
    k_img, k_ts, k_tok = jax.random.split(key, 3)

    diffused = jax.random.uniform(k_img, (2, 3, 64, 64), jnp.float32)   # images in [0,1]
    ts = jax.random.randint(k_ts, (2,), 0, 1000, jnp.int32)             # timesteps
    tokens = jax.random.randint(k_tok, (2, SEQ), 0, VOCAB, jnp.int32)   # text tokens

    params = init_params(jax.random.PRNGKey(42))

    encode = jax.jit(encode_images_and_texts)
    img_emb, txt_emb = encode(diffused, ts, tokens, params)
    img_emb = jax.block_until_ready(img_emb)
    txt_emb = jax.block_until_ready(txt_emb)

    # correctness: match pure-JAX reference and unit-norm property of F.normalize
    ref_i = _ref_images(diffused, ts, params)
    ref_t = _ref_texts(tokens, params)
    assert img_emb.shape == (2, D_EMBED) and txt_emb.shape == (2, D_EMBED)
    assert jnp.allclose(img_emb, ref_i, atol=2e-2, rtol=2e-2)
    assert jnp.allclose(txt_emb, ref_t, atol=2e-2, rtol=2e-2)
    assert jnp.allclose(jnp.linalg.norm(img_emb, axis=-1), 1.0, atol=1e-3)
    assert jnp.allclose(jnp.linalg.norm(txt_emb, axis=-1), 1.0, atol=1e-3)

    print("KERNEL_OK")
</pallas_src>

<mosaic_0001>
module attributes {stable_mosaic.version = 11 : i64} {
  func.func @_glide_clip_kernel(%arg0: i32, %arg1: memref<8x16x768xf32, #tpu.memory_space<vmem>>, %arg2: memref<8x128xf32, #tpu.memory_space<vmem>>, %arg3: memref<8x8x128xf32, #tpu.memory_space<vmem>>, %arg4: memref<768x128xbf16, #tpu.memory_space<vmem>>, %arg5: memref<128x128xbf16, #tpu.memory_space<vmem>>, %arg6: memref<128x128xbf16, #tpu.memory_space<vmem>>, %arg7: memref<8x128xf32, #tpu.memory_space<vmem>>, %arg8: memref<8x128xf32, #tpu.memory_space<vmem>>) attributes {dimension_semantics = [#tpu.dimension_semantics<parallel>], iteration_bounds = array<i64: 1>, scalar_prefetch = 0 : i64, scratch_operands = 0 : i64, tpu.core_type = #tpu.core_type<tc>, window_params = [{transform_indices = @transform_0, window_bounds = array<i64: 8, 16, 768>}, {transform_indices = @transform_1, window_bounds = array<i64: 8, 128>}, {transform_indices = @transform_2, window_bounds = array<i64: 8, 8, 128>}, {pipeline_mode = #tpu.pipeline_mode<synchronous>, transform_indices = @transform_3, window_bounds = array<i64: 768, 128>}, {pipeline_mode = #tpu.pipeline_mode<synchronous>, transform_indices = @transform_4, window_bounds = array<i64: 128, 128>}, {pipeline_mode = #tpu.pipeline_mode<synchronous>, transform_indices = @transform_5, window_bounds = array<i64: 128, 128>}, {transform_indices = @transform_6, window_bounds = array<i64: 8, 128>}, {transform_indices = @transform_7, window_bounds = array<i64: 8, 128>}]} {
    %c0 = arith.constant 0 : index
    %c0_0 = arith.constant 0 : index
    %c0_1 = arith.constant 0 : index
    %0 = vector.load %arg1[%c0, %c0_0, %c0_1] : memref<8x16x768xf32, #tpu.memory_space<vmem>>, vector<8x16x768xf32>
    %cst = arith.constant dense<0.000000e+00> : vector<8x768xf32>
    %1 = vector.multi_reduction <add>, %0, %cst [1] : vector<8x16x768xf32> to vector<8x768xf32>
    %cst_2 = arith.constant 1.600000e+01 : f32
    %2 = vector.broadcast %cst_2 : f32 to vector<8x768xf32>
    %3 = arith.divf %1, %2 : vector<8x768xf32>
    %cst_3 = arith.constant 2.000000e+00 : f32
    %4 = vector.broadcast %cst_3 : f32 to vector<8x768xf32>
    %5 = arith.mulf %4, %3 : vector<8x768xf32>
    %cst_4 = arith.constant 1.000000e+00 : f32
    %6 = vector.broadcast %cst_4 : f32 to vector<8x768xf32>
    %7 = arith.subf %5, %6 : vector<8x768xf32>
    %8 = arith.truncf %7 : vector<8x768xf32> to vector<8x768xbf16>
    %c0_5 = arith.constant 0 : index
    %c0_6 = arith.constant 0 : index
    %9 = vector.load %arg4[%c0_5, %c0_6] : memref<768x128xbf16, #tpu.memory_space<vmem>>, vector<768x128xbf16>
    %cst_7 = arith.constant dense<0.000000e+00> : vector<8x128xf32>
    %10 = tpu.matmul %8, %9, %cst_7 {dimension_numbers = #tpu.dot_dimension_numbers<[1], [0], [0], [1], [0, 0, 1, 1], [], []>} : vector<8x768xbf16>, vector<768x128xbf16>, vector<8x128xf32> -> vector<8x128xf32>
    %c0_8 = arith.constant 0 : index
    %c0_9 = arith.constant 0 : index
    %11 = vector.load %arg2[%c0_8, %c0_9] : memref<8x128xf32, #tpu.memory_space<vmem>>, vector<8x128xf32>
    %12 = arith.truncf %11 : vector<8x128xf32> to vector<8x128xbf16>
    %c0_10 = arith.constant 0 : index
    %c0_11 = arith.constant 0 : index
    %13 = vector.load %arg5[%c0_10, %c0_11] : memref<128x128xbf16, #tpu.memory_space<vmem>>, vector<128x128xbf16>
    %cst_12 = arith.constant dense<0.000000e+00> : vector<8x128xf32>
    %14 = tpu.matmul %12, %13, %cst_12 {dimension_numbers = #tpu.dot_dimension_numbers<[1], [0], [0], [1], [0, 0, 1, 1], [], []>} : vector<8x128xbf16>, vector<128x128xbf16>, vector<8x128xf32> -> vector<8x128xf32>
    %15 = arith.addf %10, %14 : vector<8x128xf32>
    %16 = arith.mulf %15, %15 : vector<8x128xf32>
    %cst_13 = arith.constant dense<0.000000e+00> : vector<8xf32>
    %17 = vector.multi_reduction <add>, %16, %cst_13 [1] : vector<8x128xf32> to vector<8xf32>
    %18 = vector.shape_cast %17 : vector<8xf32> to vector<8x1xf32>
    %cst_14 = arith.constant 1.000000e-24 : f32
    %19 = vector.broadcast %cst_14 : f32 to vector<8x1xf32>
    %20 = arith.maximumf %18, %19 : vector<8x1xf32>
    %21 = math.rsqrt %20 : vector<8x1xf32>
    %22 = vector.broadcast %21 : vector<8x1xf32> to vector<8x128xf32>
    %23 = arith.mulf %15, %22 : vector<8x128xf32>
    %c0_15 = arith.constant 0 : index
    %c0_16 = arith.constant 0 : index
    %24 = vector.load %arg7[%c0_15, %c0_16] : memref<8x128xf32, #tpu.memory_space<vmem>>, vector<8x128xf32>
    tpu.vector_store %arg7[%c0_15, %c0_16], %23 {strides = array<i32>} : memref<8x128xf32, #tpu.memory_space<vmem>>, vector<8x128xf32>,
    %c0_17 = arith.constant 0 : index
    %c0_18 = arith.constant 0 : index
    %c0_19 = arith.constant 0 : index
    %25 = vector.load %arg3[%c0_17, %c0_18, %c0_19] : memref<8x8x128xf32, #tpu.memory_space<vmem>>, vector<8x8x128xf32>
    %cst_20 = arith.constant dense<0.000000e+00> : vector<8x128xf32>
    %26 = vector.multi_reduction <add>, %25, %cst_20 [1] : vector<8x8x128xf32> to vector<8x128xf32>
    %cst_21 = arith.constant 8.000000e+00 : f32
    %27 = vector.broadcast %cst_21 : f32 to vector<8x128xf32>
    %28 = arith.divf %26, %27 : vector<8x128xf32>
    %29 = arith.truncf %28 : vector<8x128xf32> to vector<8x128xbf16>
    %c0_22 = arith.constant 0 : index
    %c0_23 = arith.constant 0 : index
    %30 = vector.load %arg6[%c0_22, %c0_23] : memref<128x128xbf16, #tpu.memory_space<vmem>>, vector<128x128xbf16>
    %cst_24 = arith.constant dense<0.000000e+00> : vector<8x128xf32>
    %31 = tpu.matmul %29, %30, %cst_24 {dimension_numbers = #tpu.dot_dimension_numbers<[1], [0], [0], [1], [0, 0, 1, 1], [], []>} : vector<8x128xbf16>, vector<128x128xbf16>, vector<8x128xf32> -> vector<8x128xf32>
    %32 = arith.mulf %31, %31 : vector<8x128xf32>
    %cst_25 = arith.constant dense<0.000000e+00> : vector<8xf32>
    %33 = vector.multi_reduction <add>, %32, %cst_25 [1] : vector<8x128xf32> to vector<8xf32>
    %34 = vector.shape_cast %33 : vector<8xf32> to vector<8x1xf32>
    %cst_26 = arith.constant 1.000000e-24 : f32
    %35 = vector.broadcast %cst_26 : f32 to vector<8x1xf32>
    %36 = arith.maximumf %34, %35 : vector<8x1xf32>
    %37 = math.rsqrt %36 : vector<8x1xf32>
    %38 = vector.broadcast %37 : vector<8x1xf32> to vector<8x128xf32>
    %39 = arith.mulf %31, %38 : vector<8x128xf32>
    %c0_27 = arith.constant 0 : index
    %c0_28 = arith.constant 0 : index
    %40 = vector.load %arg8[%c0_27, %c0_28] : memref<8x128xf32, #tpu.memory_space<vmem>>, vector<8x128xf32>
    tpu.vector_store %arg8[%c0_27, %c0_28], %39 {strides = array<i32>} : memref<8x128xf32, #tpu.memory_space<vmem>>, vector<8x128xf32>,
    return
  }
  func.func @transform_0(%arg0: i32) -> (i32, i32, i32) {
    %c0_i32 = arith.constant 0 : i32
    %c0_i32_0 = arith.constant 0 : i32
    %c0_i32_1 = arith.constant 0 : i32
    return %arg0, %c0_i32, %c0_i32_0 : i32, i32, i32
  }
  func.func @transform_1(%arg0: i32) -> (i32, i32) {
    %c0_i32 = arith.constant 0 : i32
    %c0_i32_0 = arith.constant 0 : i32
    return %arg0, %c0_i32 : i32, i32
  }
  func.func @transform_2(%arg0: i32) -> (i32, i32, i32) {
    %c0_i32 = arith.constant 0 : i32
    %c0_i32_0 = arith.constant 0 : i32
    %c0_i32_1 = arith.constant 0 : i32
    return %arg0, %c0_i32, %c0_i32_0 : i32, i32, i32
  }
  func.func @transform_3(%arg0: i32) -> (i32, i32) {
    %c0_i32 = arith.constant 0 : i32
    %c0_i32_0 = arith.constant 0 : i32
    %c0_i32_1 = arith.constant 0 : i32
    return %c0_i32, %c0_i32_0 : i32, i32
  }
  func.func @transform_4(%arg0: i32) -> (i32, i32) {
    %c0_i32 = arith.constant 0 : i32
    %c0_i32_0 = arith.constant 0 : i32
    %c0_i32_1 = arith.constant 0 : i32
    return %c0_i32, %c0_i32_0 : i32, i32
  }
  func.func @transform_5(%arg0: i32) -> (i32, i32) {
    %c0_i32 = arith.constant 0 : i32
    %c0_i32_0 = arith.constant 0 : i32
    %c0_i32_1 = arith.constant 0 : i32
    return %c0_i32, %c0_i32_0 : i32, i32
  }
  func.func @transform_6(%arg0: i32) -> (i32, i32) {
    %c0_i32 = arith.constant 0 : i32
    %c0_i32_0 = arith.constant 0 : i32
    return %arg0, %c0_i32 : i32, i32
  }
  func.func @transform_7(%arg0: i32) -> (i32, i32) {
    %c0_i32 = arith.constant 0 : i32
    %c0_i32_0 = arith.constant 0 : i32
    return %arg0, %c0_i32 : i32, i32
  }
}

</mosaic_0001>

<bundles_post_ra>
// kernel: encode_images_and_texts.1
= control target key start
LH: loop header
LB: loop body
LE: loop exit
PB: predicated region body
PF: predicated region fallthrough
CT: control target
= control target key end

     0   :  { %v1948_v0 = vmov 0.0   ;;  %vm1949_vm0 = vmmov 0   ;;  %vm949_vm1 = vcmask 1041409   ;;  %vm951_vm2 = vcmask 1042434   ;;  %s2572_s4 = inlined_call_operand.vmem [shape: bf16[128,128], index: 4, kind: input, shape index: {}]   ;;  %s2573_s3 = inlined_call_operand.vmem [shape: bf16[768,128], index: 3, kind: input, shape index: {}]   ;;  %s2574_s1 = inlined_call_operand.vmem [shape: f32[8,128], index: 1, kind: input, shape index: {}]   ;;  %s2575_s0 = inlined_call_operand.vmem [shape: f32[8,16,768], index: 0, kind: input, shape index: {}]   ;;  %s2576_s5 = inlined_call_operand.vmem [shape: bf16[128,128], index: 5, kind: input, shape index: {}]   ;;  %s2577_s2 = inlined_call_operand.vmem [shape: f32[8,8,128], index: 2, kind: input, shape index: {}]   ;;  %s2578_s6 = inlined_call_operand.vmem [shape: f32[8,128], index: 6, kind: output, shape index: {0}]   ;;  %s2579_s7 = inlined_call_operand.vmem [shape: f32[8,128], index: 7, kind: output, shape index: {1}]  }
   0x1   :  { %1838 = vmatprep.subr.bf16.mxu0 %v1948_v0  ;;  %v1880_v1 = vld [vmem:[%s2572_s4 + $0x38] sm:$0xff]   ;;  %1854 = vmatprep.mubr.msk.bf16.mxu0 %vm1949_vm0, %v1948_v0  ;;  %v1883_v4 = vld [vmem:[%s2572_s4 + $0x30] sm:$0xff]   ;;  %v1886_v7 = vld [vmem:[%s2572_s4 + $0x28] sm:$0xff]   ;;  %vm953_vm3 = vcmask 1043459   ;;  %vm955_vm4 = vcmask 1044484   ;;  %vm957_vm5 = vcmask 1045509  }
   0x2   :  { %v1881_v2 = vld [vmem:[%s2573_s3 + $0x78] sm:$0xff]   ;;  %1839 = vmatpush3.bf16.msra.mxu0 %v1880_v1  ;;  %v1884_v5 = vld [vmem:[%s2573_s3 + $0x70] sm:$0xff]   ;;  %v1887_v8 = vld [vmem:[%s2573_s3 + $0x68] sm:$0xff]   ;;  %vm959_vm6 = vcmask 1046534   ;;  %vm961_vm7 = vcmask 1047559  }
   0x3   :  { %v1882_v3 = vld [vmem:[%s2573_s3 + $0x38] sm:$0xff]   ;;  %1763 = vmatprep.subr.bf16.mxu1 %v1881_v2  ;;  %1840 = vmatprep.subr.bf16.mxu0 %v1948_v0  ;;  %v1885_v6 = vld [vmem:[%s2573_s3 + $0x30] sm:$0xff]   ;;  %v1888_v9 = vld [vmem:[%s2573_s3 + $0x28] sm:$0xff]  }
   0x4   :  { %1764 = vmatpush3.bf16.msra.mxu1 %v1882_v3  ;;  %v1889_v10 = vld [vmem:[%s2572_s4 + $0x20] sm:$0xff]   ;;  %v1893_v13 = vld [vmem:[%s2573_s3 + $0x58] sm:$0xff]   ;;  %v1896_v16 = vld [vmem:[%s2573_s3 + $0x50] sm:$0xff]  }
   0x5   :  { %1765 = vmatprep.subr.bf16.mxu1 %v1884_v5  ;;  %v1890_v11 = vld [vmem:[%s2573_s3 + $0x60] sm:$0xff]   ;;  %v1892_v14 = vld [vmem:[%s2572_s4 + $0x18] sm:$0xff]   ;;  %v1895_v17 = vld [vmem:[%s2572_s4 + $0x10] sm:$0xff]  }
   0x6   :  { %1841 = vmatpush3.bf16.msra.mxu0 %v1883_v4  ;;  %v1891_v12 = vld [vmem:[%s2573_s3 + $0x20] sm:$0xff]   ;;  %v1894_v15 = vld [vmem:[%s2573_s3 + $0x18] sm:$0xff]   ;;  %v1897_v18 = vld [vmem:[%s2573_s3 + $0x10] sm:$0xff]  }
   0x7   :  { %1842 = vmatprep.subr.bf16.mxu0 %v1948_v0  ;;  %v1898_v19 = vld [vmem:[%s2572_s4 + $0x8] sm:$0xff]   ;;  %v1902_v22 = vld [vmem:[%s2573_s3 + $0x40] sm:$0xff]   ;;  %v33_v26 = vld [vmem:[%s2575_s0 + $0x38] sm:$0xff] }
   0x8   :  { %1766 = vmatpush3.bf16.msra.mxu1 %v1885_v6  ;;  %v1899_v20 = vld [vmem:[%s2573_s3 + $0x48] sm:$0xff]   ;;  %v1901_v23 = vld [vmem:[%s2572_s4] sm:$0xff]   ;;  %v45_v28 = vld [vmem:[%s2575_s0 + $0x98] sm:$0xff] }
   0x9   :  { %1767 = vmatprep.subr.bf16.mxu1 %v1887_v8  ;;  %v1900_v21 = vld [vmem:[%s2573_s3 + $0x8] sm:$0xff]   ;;  %v747_v24 = vld [vmem:[%s2574_s1] sm:$0xff]  ;;  %v57_v32 = vld [vmem:[%s2575_s0 + $0xf8] sm:$0xff] }
   0xa   :  { %1843 = vmatpush3.bf16.msra.mxu0 %v1886_v7  ;;  %v27_v25 = vld [vmem:[%s2575_s0 + $0x8] sm:$0xff]  ;;  %v1903_v31 = vld [vmem:[%s2573_s3] sm:$0xff]   ;;  %v69_v34 = vld [vmem:[%s2575_s0 + $0x158] sm:$0xff]  ;;  %v748_v42 = vpack.c.bf16 %v747_v24, %v747_v24 }
   0xb   :  { %1844 = vmatprep.subr.bf16.mxu0 %v1948_v0  ;;  %v39_v27 = vld [vmem:[%s2575_s0 + $0x68] sm:$0xff]  ;;  %v129_v30 = vadd.f32 %v33_v26, %v27_v25  ;;  %v81_v37 = vld [vmem:[%s2575_s0 + $0x1b8] sm:$0xff] }
   0xc   :  { %1768 = vmatpush3.bf16.msra.mxu1 %v1888_v9  ;;  %v51_v29 = vld [vmem:[%s2575_s0 + $0xc8] sm:$0xff]  ;;  %v171_v35 = vadd.f32 %v45_v28, %v39_v27  ;;  %v93_v43 = vld [vmem:[%s2575_s0 + $0x218] sm:$0xff] }
   0xd   :  { %1769 = vmatprep.subr.bf16.mxu1 %v1890_v11  ;;  %v63_v33 = vld [vmem:[%s2575_s0 + $0x128] sm:$0xff]  ;;  %v130_v39 = vrot.slane %v129_v30, 4  ;;  %v213_v40 = vadd.f32 %v57_v32, %v51_v29  ;;  %v105_v45 = vld [vmem:[%s2575_s0 + $0x278] sm:$0xff] }
   0xe   :  { %1845 = vmatpush3.bf16.msra.mxu0 %v1889_v10  ;;  %v75_v36 = vld [vmem:[%s2575_s0 + $0x188] sm:$0xff]  ;;  %v255_v41 = vadd.f32 %v69_v34, %v63_v33  ;;  %v172_v46 = vrot.slane %v171_v35, 4  ;;  %v117_v49 = vld [vmem:[%s2575_s0 + $0x2d8] sm:$0xff]  ;;  %v1908_v34 = vld [vmem:[%s2573_s3 + $0xf0] sm:$0xff]  }
   0xf   :  { %1846 = vmatprep.subr.bf16.mxu0 %v1948_v0  ;;  %v87_v38 = vld [vmem:[%s2575_s0 + $0x1e8] sm:$0xff]  ;;  %v297_v47 = vadd.f32 %v81_v37, %v75_v36  ;;  %v131_v50 = vadd.f32 %v130_v39, %v129_v30  ;;  %v214_v51 = vrot.slane %v213_v40, 4  ;;  %v1904_v58 = vld [vmem:[%s2573_s3 + $0xf8] sm:$0xff]   ;;  %v1909_v39 = vld [vmem:[%s2573_s3 + $0xb0] sm:$0xff]  }
  0x10   :  { %1770 = vmatpush3.bf16.msra.mxu1 %v1891_v12  ;;  %v99_v44 = vld [vmem:[%s2575_s0 + $0x248] sm:$0xff]  ;;  %v256_v52 = vrot.slane %v255_v41, 4  ;;  %v339_v53 = vadd.f32 %v93_v43, %v87_v38  ;;  %v173_v54 = vadd.f32 %v172_v46, %v171_v35  ;;  %v1906_v29 = vld [vmem:[%s2573_s3 + $0x178] sm:$0xff]  }
  0x11   :  { %1771 = vmatprep.subr.bf16.mxu1 %v1893_v13  ;;  %v111_v48 = vld [vmem:[%s2575_s0 + $0x2a8] sm:$0xff]  ;;  %v298_v55 = vrot.slane %v297_v47, 4  ;;  %v381_v56 = vadd.f32 %v105_v45, %v99_v44  ;;  %v132_v59 = vrot.slane %v131_v50, 2  ;;  %v215_v60 = vadd.f32 %v214_v51, %v213_v40 }
  0x12   :  { %1847 = vmatpush3.bf16.msra.mxu0 %v1892_v14  ;;  %v423_v57 = vadd.f32 %v117_v49, %v111_v48  ;;  %v257_v61 = vadd.f32 %v256_v52, %v255_v41  ;;  %v340_v62 = vrot.slane %v339_v53, 4  ;;  %v174_v63 = vrot.slane %v173_v54, 2 }
  0x13   :  { %1848 = vmatprep.subr.bf16.mxu0 %v1948_v0  ;;  %v299_v1 = vadd.f32 %v298_v55, %v297_v47  ;;  %v382_v2 = vrot.slane %v381_v56, 4  ;;  %v133_v4 = vadd.f32 %v132_v59, %v131_v50  ;;  %v216_v5 = vrot.slane %v215_v60, 2 }
  0x14   :  { %1772 = vmatpush3.bf16.msra.mxu1 %v1894_v15  ;;  %v424_v3 = vrot.slane %v423_v57, 4  ;;  %v258_v6 = vrot.slane %v257_v61, 2  ;;  %v341_v7 = vadd.f32 %v340_v62, %v339_v53  ;;  %v175_v8 = vadd.f32 %v174_v63, %v173_v54 }
  0x15   :  { %1773 = vmatprep.subr.bf16.mxu1 %v1896_v16  ;;  %v300_v9 = vrot.slane %v299_v1, 2  ;;  %v383_v10 = vadd.f32 %v382_v2, %v381_v56  ;;  %v134_v12 = vrot.slane %v133_v4, 1  ;;  %v217_v13 = vadd.f32 %v216_v5, %v215_v60  ;;  %v26_v56 = vld [vmem:[%s2575_s0] sm:$0xff]  ;;  %v1912_v5 = vld [vmem:[%s2573_s3 + $0xe8] sm:$0xff]  }
  0x16   :  { %1849 = vmatpush3.bf16.msra.mxu0 %v1895_v17  ;;  %v425_v11 = vadd.f32 %v424_v3, %v423_v57  ;;  %v259_v14 = vadd.f32 %v258_v6, %v257_v61  ;;  %v342_v15 = vrot.slane %v341_v7, 2  ;;  %v176_v16 = vrot.slane %v175_v8, 1  ;;  %v32_v61 = vld [vmem:[%s2575_s0 + $0x30] sm:$0xff]  ;;  %v38_v3 = vld [vmem:[%s2575_s0 + $0x60] sm:$0xff] }
  0x17   :  { %1850 = vmatprep.subr.bf16.mxu0 %v1948_v0  ;;  %v301_v17 = vadd.f32 %v300_v9, %v299_v1 }
  0x18   :  { %1774 = vmatpush3.bf16.msra.mxu1 %v1897_v18  ;;  %v384_v18 = vrot.slane %v383_v10, 2  ;;  %v343_v24 = vadd.f32 %v342_v15, %v341_v7  ;;  %v177_v25 = vadd.f32 %v176_v16, %v175_v8 }
  0x19   :  { %1775 = vmatprep.subr.bf16.mxu1 %v1899_v20  ;;  %v1905_v20 = vld [vmem:[%s2573_s3 + $0xb8] sm:$0xff]   ;;  %v302_v26 = vrot.slane %v301_v17, 1 }
  0x1a   :  { %1851 = vmatpush3.bf16.msra.mxu0 %v1898_v19  ;;  %v426_v19 = vrot.slane %v425_v11, 2  ;;  %v385_v27 = vadd.f32 %v384_v18, %v383_v10  ;;  %v344_v32 = vrot.slane %v343_v24, 1  ;;  %v466_v38 = vmul.f32 0.0625, %v177_v25  ;;  %v50_v10 = vld [vmem:[%s2575_s0 + $0xc0] sm:$0xff]  ;;  %v68_v18 = vld [vmem:[%s2575_s0 + $0x150] sm:$0xff] }
  0x1b   :  { %1852 = vmatprep.subr.bf16.mxu0 %v1948_v0  ;;  %v303_v35 = vadd.f32 %v302_v26, %v301_v17  ;;  %v62_v17 = vld [vmem:[%s2575_s0 + $0x120] sm:$0xff]  ;;  %v122_v25 = vadd.f32 %v32_v61, %v26_v56  ;;  %v1920_v61 = vld [vmem:[%s2573_s3 + $0xd8] sm:$0xff]  }
  0x1c   :  { %1776 = vmatpush3.bf16.msra.mxu1 %v1900_v21  ;;  %v135_v21 = vadd.f32 %v134_v12, %v133_v4  ;;  %v427_v28 = vadd.f32 %v426_v19, %v425_v11  ;;  %v386_v36 = vrot.slane %v385_v27, 1  ;;  %v345_v40 = vadd.f32 %v344_v32, %v343_v24  ;;  %v44_v4 = vld [vmem:[%s2575_s0 + $0x90] sm:$0xff]  ;;  %v1913_v12 = vld [vmem:[%s2573_s3 + $0xa8] sm:$0xff]   ;;  %v86_v24 = vld [vmem:[%s2575_s0 + $0x1e0] sm:$0xff] }
  0x1d   :  { %1777 = vmatprep.subr.bf16.mxu1 %v1902_v22  ;;  %v218_v22 = vrot.slane %v217_v13, 1  ;;  %v484_v46 = vmul.f32 0.0625, %v303_v35  ;;  %v514_v47 = vmul.f32 2.0, %v466_v38  ;;  %v56_v11 = vld [vmem:[%s2575_s0 + $0xf0] sm:$0xff]  ;;  %v1916_v35 = vld [vmem:[%s2573_s3 + $0xe0] sm:$0xff]  }
  0x1e   :  { %1853 = vmatpush3.bf16.msra.mxu0 %v1901_v23  ;;  %v260_v23 = vrot.slane %v259_v14, 1  ;;  %v460_v33 = vmul.f32 0.0625, %v135_v21  ;;  %v428_v37 = vrot.slane %v427_v28, 1  ;;  %v387_v44 = vadd.f32 %v386_v36, %v385_v27 }
  0x1f   :  { %1785 = vmatprep.subr.bf16.mxu0 %v1904_v58  ;;  %v219_v30 = vadd.f32 %v218_v22, %v217_v13  ;;  %v490_v48 = vmul.f32 0.0625, %v345_v40  ;;  %v532_v54 = vmul.f32 2.0, %v484_v46  ;;  %v1649_v55 = vadd.f32 -1.0, %v514_v47  ;;  %v74_v22 = vld [vmem:[%s2575_s0 + $0x180] sm:$0xff] }
  0x20   :  { %1778 = vmatpush3.bf16.msra.mxu1 %v1903_v31  ;;  %v261_v31 = vadd.f32 %v260_v23, %v259_v14  ;;  %v508_v43 = vmul.f32 2.0, %v460_v33  ;;  %v429_v45 = vadd.f32 %v428_v37, %v427_v28  ;;  %v496_v52 = vmul.f32 0.0625, %v387_v44  ;;  %v80_v23 = vld [vmem:[%s2575_s0 + $0x1b0] sm:$0xff]  ;;  %v1917_v40 = vld [vmem:[%s2573_s3 + $0xa0] sm:$0xff]  }
  0x21   :  { %1855 = vmatmul.mubr.bf16.vlgmr.msra.gmra.mxu0 %v748_v42  ;;  %1807 = vmatprep.subr.bf16.mxu1 %v1906_v29  ;;  %v472_v41 = vmul.f32 0.0625, %v219_v30  ;;  %v538_v57 = vmul.f32 2.0, %v490_v48  ;;  %v1667_v1 = vadd.f32 -1.0, %v532_v54  ;;  %v610_v2 = vpack.c.bf16 %v1649_v55, %v1649_v55  ;;  %v92_v30 = vld [vmem:[%s2575_s0 + $0x210] sm:$0xff]  ;;  %v110_v48 = vld [vmem:[%s2575_s0 + $0x2a0] sm:$0xff] }
  0x22   :  { %1786 = vmatpush3.bf16.msra.mxu0 %v1905_v20  ;;  %v478_v42 = vmul.f32 0.0625, %v261_v31  ;;  %v1643_v51 = vadd.f32 -1.0, %v508_v43  ;;  %v502_v53 = vmul.f32 0.0625, %v429_v45  ;;  %v544_v62 = vmul.f32 2.0, %v496_v52  ;;  %v104_v43 = vld [vmem:[%s2575_s0 + $0x270] sm:$0xff] }
  0x23   :  { %1787 = vmatprep.subr.bf16.mxu0 %v1908_v34  ;;  %v520_v49 = vmul.f32 2.0, %v472_v41  ;;  %v1673_v6 = vadd.f32 -1.0, %v538_v57  ;;  %v628_v15 = vpack.c.bf16 %v1667_v1, %v1667_v1  ;;  %v908_v16 = vunpack.c.l.b16 %v610_v2 }
  0x24   :  { %v526_v50 = vmul.f32 2.0, %v478_v42  ;;  %v604_v60 = vpack.c.bf16 %v1643_v51, %v1643_v51  ;;  %v550_v63 = vmul.f32 2.0, %v502_v53  ;;  %v1679_v13 = vadd.f32 -1.0, %v544_v62  ;;  %v98_v42 = vld [vmem:[%s2575_s0 + $0x240] sm:$0xff]  ;;  %v1921_v62 = vld [vmem:[%s2573_s3 + $0x98] sm:$0xff]  }
  0x25   :  { %v1655_v58 = vadd.f32 -1.0, %v520_v49  ;;  %v634_v19 = vpack.c.bf16 %v1673_v6, %v1673_v6  ;;  %v926_v28 = vunpack.c.l.b16 %v628_v15  ;;  %v123_v33 = vrot.slane %v122_v25, 4  ;;  %v116_v49 = vld [vmem:[%s2575_s0 + $0x2d0] sm:$0xff] }
  0x26   :  { %1788 = vmatpush3.bf16.msra.mxu0 %v1909_v39  ;;  %v1661_v59 = vadd.f32 -1.0, %v526_v50  ;;  %v902_v9 = vunpack.c.l.b16 %v604_v60  ;;  %v1685_v14 = vadd.f32 -1.0, %v550_v63  ;;  %v640_v26 = vpack.c.bf16 %v1679_v13, %v1679_v13 }
  0x27   :  { %v616_v7 = vpack.c.bf16 %v1655_v58, %v1655_v58  ;;  %1789 = vmatprep.subr.bf16.mxu0 %v1912_v5  ;;  %v932_v31 = vunpack.c.l.b16 %v634_v19  ;;  %v164_v34 = vadd.f32 %v44_v4, %v38_v3  ;;  %v206_v39 = vadd.f32 %v56_v11, %v50_v10 }
  0x28   :  { %v622_v8 = vpack.c.bf16 %v1661_v59, %v1661_v59  ;;  %v646_v27 = vpack.c.bf16 %v1685_v14, %v1685_v14  ;;  %v963_v29 = vsel %vm949_vm1, %v908_v16, %v902_v9  ;;  %v938_v36 = vunpack.c.l.b16 %v640_v26  ;;  %v1924_v16 = vld [vmem:[%s2573_s3 + $0xd0] sm:$0xff]  }
  0x29   :  { %v914_v20 = vunpack.c.l.b16 %v616_v7  ;;  %v124_v44 = vadd.f32 %v123_v33, %v122_v25  ;;  %v165_v45 = vrot.slane %v164_v34, 4  ;;  %v248_v46 = vadd.f32 %v68_v18, %v62_v17  ;;  %v1925_v25 = vld [vmem:[%s2573_s3 + $0x90] sm:$0xff]  }
  0x2a   :  { %v920_v21 = vunpack.c.l.b16 %v622_v8  ;;  %1790 = vmatpush3.bf16.msra.mxu0 %v1913_v12  ;;  %v944_v37 = vunpack.c.l.b16 %v646_v27  ;;  %v207_v50 = vrot.slane %v206_v39, 4  ;;  %v290_v51 = vadd.f32 %v80_v23, %v74_v22 }
  0x2b   :  { %v964_v32 = vsel %vm951_vm2, %v914_v20, %v963_v29  ;;  %1791 = vmatprep.subr.bf16.mxu0 %v1916_v35  ;;  %v332_v52 = vadd.f32 %v92_v30, %v86_v24  ;;  %v125_v54 = vrot.slane %v124_v44, 2  ;;  %v166_v55 = vadd.f32 %v165_v45, %v164_v34  ;;  %v1928_v34 = vld [vmem:[%s2573_s3 + $0xc8] sm:$0xff]  }
  0x2c   :  { %v965_v38 = vsel %vm953_vm3, %v920_v21, %v964_v32  ;;  %v249_v56 = vrot.slane %v248_v46, 4  ;;  %v208_v58 = vadd.f32 %v207_v50, %v206_v39  ;;  %v291_v59 = vrot.slane %v290_v51, 4  ;;  %v1929_v39 = vld [vmem:[%s2573_s3 + $0x88] sm:$0xff]  }
  0x2d   :  { %v966_v41 = vsel %vm955_vm4, %v926_v28, %v965_v38  ;;  %v333_v60 = vrot.slane %v332_v52, 4  ;;  %v126_v1 = vadd.f32 %v125_v54, %v124_v44  ;;  %v167_v2 = vrot.slane %v166_v55, 2 }
  0x2e   :  { %v967_v47 = vsel %vm957_vm5, %v932_v31, %v966_v41  ;;  %1792 = vmatpush3.bf16.msra.mxu0 %v1917_v40  ;;  %v250_v3 = vadd.f32 %v249_v56, %v248_v46  ;;  %v209_v4 = vrot.slane %v208_v58, 2  ;;  %v292_v5 = vadd.f32 %v291_v59, %v290_v51  ;;  %v1932_v56 = vld [vmem:[%s2573_s3 + $0xc0] sm:$0xff]  }
  0x2f   :  { %v968_v53 = vsel %vm959_vm6, %v938_v36, %v967_v47  ;;  %v334_v6 = vadd.f32 %v333_v60, %v332_v52  ;;  %v374_v7 = vadd.f32 %v104_v43, %v98_v42  ;;  %1793 = vmatprep.subr.bf16.mxu0 %v1920_v61  ;;  %v127_v8 = vrot.slane %v126_v1, 1  ;;  %v1933_v61 = vld [vmem:[%s2573_s3 + $0x80] sm:$0xff]  }
  0x30   :  { %v969_v57 = vsel %vm961_vm7, %v944_v37, %v968_v53  ;;  %v168_v9 = vadd.f32 %v167_v2, %v166_v55  ;;  %v251_v10 = vrot.slane %v250_v3, 2  ;;  %v416_v11 = vadd.f32 %v116_v49, %v110_v48 }
  0x31   :  { %v999_v63 = vpack.c.b16 %v969_v57, %v969_v57  ;;  %v210_v12 = vadd.f32 %v209_v4, %v208_v58  ;;  %v293_v13 = vrot.slane %v292_v5, 2  ;;  %v335_v14 = vrot.slane %v334_v6, 2 }
  0x32   :  { %1794 = vmatpush3.bf16.msra.mxu0 %v1921_v62  ;;  %v375_v15 = vrot.slane %v374_v7, 4  ;;  %v128_v17 = vadd.f32 %v127_v8, %v126_v1  ;;  %v169_v18 = vrot.slane %v168_v9, 1  ;;  %v252_v19 = vadd.f32 %v251_v10, %v250_v3 }
  0x33   :  { %1330 = vmatprep.mubr.bf16.mxu1 %v999_v63  ;;  %v417_v20 = vrot.slane %v416_v11, 4  ;;  %v211_v21 = vrot.slane %v210_v12, 1  ;;  %v294_v22 = vadd.f32 %v293_v13, %v292_v5  ;;  %v336_v23 = vadd.f32 %v335_v14, %v334_v6  ;;  %1795 = vmatprep.subr.bf16.mxu0 %v1924_v16  ;;  %v41_v16 = vld [vmem:[%s2575_s0 + $0x78] sm:$0xff] }
  0x34   :  { %v376_v24 = vadd.f32 %v375_v15, %v374_v7  ;;  %v170_v26 = vadd.f32 %v169_v18, %v168_v9  ;;  %v253_v27 = vrot.slane %v252_v19, 1  ;;  %v459_v29 = vmul.f32 0.0625, %v128_v17  ;;  %v29_v7 = vld [vmem:[%s2575_s0 + $0x18] sm:$0xff] }
  0x35   :  { %v418_v28 = vadd.f32 %v417_v20, %v416_v11  ;;  %v212_v30 = vadd.f32 %v211_v21, %v210_v12  ;;  %v295_v31 = vrot.slane %v294_v22, 1  ;;  %v337_v32 = vrot.slane %v336_v23, 1  ;;  %v35_v11 = vld [vmem:[%s2575_s0 + $0x48] sm:$0xff]  ;;  %v53_v21 = vld [vmem:[%s2575_s0 + $0xd8] sm:$0xff] }
  0x36   :  { %v377_v33 = vrot.slane %v376_v24, 2  ;;  %1796 = vmatpush3.bf16.msra.mxu0 %v1925_v25  ;;  %v254_v35 = vadd.f32 %v253_v27, %v252_v19  ;;  %v465_v37 = vmul.f32 0.0625, %v170_v26  ;;  %v507_v38 = vmul.f32 2.0, %v459_v29  ;;  %v47_v20 = vld [vmem:[%s2575_s0 + $0xa8] sm:$0xff] }
  0x37   :  { %v419_v36 = vrot.slane %v418_v28, 2  ;;  %v296_v40 = vadd.f32 %v295_v31, %v294_v22  ;;  %v338_v41 = vadd.f32 %v337_v32, %v336_v23  ;;  %v471_v43 = vmul.f32 0.0625, %v212_v30  ;;  %1797 = vmatprep.subr.bf16.mxu0 %v1928_v34  ;;  %v59_v22 = vld [vmem:[%s2575_s0 + $0x108] sm:$0xff]  ;;  %v77_v32 = vld [vmem:[%s2575_s0 + $0x198] sm:$0xff] }
  0x38   :  { %v378_v42 = vadd.f32 %v377_v33, %v376_v24  ;;  %v477_v45 = vmul.f32 0.0625, %v254_v35  ;;  %v513_v46 = vmul.f32 2.0, %v465_v37  ;;  %v1642_v47 = vadd.f32 -1.0, %v507_v38  ;;  %v71_v29 = vld [vmem:[%s2575_s0 + $0x168] sm:$0xff]  ;;  %v89_v38 = vld [vmem:[%s2575_s0 + $0x1f8] sm:$0xff] }
  0x39   :  { %v420_v44 = vadd.f32 %v419_v36, %v418_v28  ;;  %v483_v49 = vmul.f32 0.0625, %v296_v40  ;;  %v489_v50 = vmul.f32 0.0625, %v338_v41  ;;  %v519_v51 = vmul.f32 2.0, %v471_v43  ;;  %v65_v28 = vld [vmem:[%s2575_s0 + $0x138] sm:$0xff]  ;;  %v83_v33 = vld [vmem:[%s2575_s0 + $0x1c8] sm:$0xff] }
  0x3a   :  { %v379_v48 = vrot.slane %v378_v42, 1  ;;  %1798 = vmatpush3.bf16.msra.mxu0 %v1929_v39  ;;  %v525_v53 = vmul.f32 2.0, %v477_v45  ;;  %v1648_v54 = vadd.f32 -1.0, %v513_v46  ;;  %v603_v55 = vpack.c.bf16 %v1642_v47, %v1642_v47  ;;  %v95_v39 = vld [vmem:[%s2575_s0 + $0x228] sm:$0xff] }
  0x3b   :  { %v421_v52 = vrot.slane %v420_v44, 1  ;;  %v531_v58 = vmul.f32 2.0, %v483_v49  ;;  %v537_v59 = vmul.f32 2.0, %v489_v50  ;;  %v1654_v60 = vadd.f32 -1.0, %v519_v51  ;;  %1799 = vmatprep.subr.bf16.mxu0 %v1932_v56  ;;  %v107_v56 = vld [vmem:[%s2575_s0 + $0x288] sm:$0xff] }
  0x3c   :  { %v380_v57 = vadd.f32 %v379_v48, %v378_v42  ;;  %v1660_v63 = vadd.f32 -1.0, %v525_v53  ;;  %v609_v1 = vpack.c.bf16 %v1648_v54, %v1648_v54  ;;  %v901_v2 = vunpack.c.l.b16 %v603_v55  ;;  %v101_v55 = vld [vmem:[%s2575_s0 + $0x258] sm:$0xff] }
  0x3d   :  { %v422_v62 = vadd.f32 %v421_v52, %v420_v44  ;;  %v1666_v4 = vadd.f32 -1.0, %v531_v58  ;;  %v1672_v5 = vadd.f32 -1.0, %v537_v59  ;;  %v615_v6 = vpack.c.bf16 %v1654_v60, %v1654_v60 }
  0x3e   :  { %v495_v3 = vmul.f32 0.0625, %v380_v57  ;;  %1800 = vmatpush3.bf16.msra.mxu0 %v1933_v61  ;;  %v621_v9 = vpack.c.bf16 %v1660_v63, %v1660_v63  ;;  %v907_v10 = vunpack.c.l.b16 %v609_v1  ;;  %v143_v23 = vadd.f32 %v35_v11, %v29_v7  ;;  %v1907_v61 = vld [vmem:[%s2573_s3 + $0x138] sm:$0xff]   ;;  %v119_v63 = vld [vmem:[%s2575_s0 + $0x2e8] sm:$0xff] }
  0x3f   :  { %v501_v8 = vmul.f32 0.0625, %v422_v62  ;;  %1858 = vmatprep.subr.bf16.mxu0 %v1948_v0  ;;  %v627_v13 = vpack.c.bf16 %v1666_v4, %v1666_v4  ;;  %v633_v14 = vpack.c.bf16 %v1672_v5, %v1672_v5  ;;  %v913_v15 = vunpack.c.l.b16 %v615_v6  ;;  %v113_v62 = vld [vmem:[%s2575_s0 + $0x2b8] sm:$0xff]  ;;  %v1910_v5 = vld [vmem:[%s2573_s3 + $0x170] sm:$0xff]  }
  0x40   :  { %v543_v12 = vmul.f32 2.0, %v495_v3  ;;  %v919_v18 = vunpack.c.l.b16 %v621_v9  ;;  %v950_v19 = vsel %vm949_vm1, %v907_v10, %v901_v2  ;;  %v144_v34 = vrot.slane %v143_v23, 4 }
  0x41   :  { %v549_v17 = vmul.f32 2.0, %v501_v8  ;;  %v925_v25 = vunpack.c.l.b16 %v627_v13  ;;  %v931_v26 = vunpack.c.l.b16 %v633_v14  ;;  %v952_v27 = vsel %vm951_vm2, %v913_v15, %v950_v19 }
  0x42   :  { %v1678_v24 = vadd.f32 -1.0, %v543_v12  ;;  %v954_v31 = vsel %vm953_vm3, %v919_v18, %v952_v27  ;;  %v185_v35 = vadd.f32 %v47_v20, %v41_v16  ;;  %v227_v40 = vadd.f32 %v59_v22, %v53_v21  ;;  %v1914_v22 = vld [vmem:[%s2573_s3 + $0x168] sm:$0xff]  }
  0x43   :  { %v1684_v30 = vadd.f32 -1.0, %v549_v17  ;;  %v956_v37 = vsel %vm955_vm4, %v925_v25, %v954_v31  ;;  %v269_v41 = vadd.f32 %v71_v29, %v65_v28  ;;  %v145_v44 = vadd.f32 %v144_v34, %v143_v23  ;;  %v1911_v17 = vld [vmem:[%s2573_s3 + $0x130] sm:$0xff]   ;;  %v1915_v31 = vld [vmem:[%s2573_s3 + $0x128] sm:$0xff]  }
  0x44   :  { %v639_v36 = vpack.c.bf16 %v1678_v24, %v1678_v24  ;;  %v958_v43 = vsel %vm957_vm5, %v931_v26, %v956_v37  ;;  %v186_v45 = vrot.slane %v185_v35, 4  ;;  %v228_v47 = vrot.slane %v227_v40, 4 }
  0x45   :  { %v645_v42 = vpack.c.bf16 %v1684_v30, %v1684_v30  ;;  %v270_v48 = vrot.slane %v269_v41, 4  ;;  %v311_v49 = vadd.f32 %v83_v33, %v77_v32  ;;  %v146_v51 = vrot.slane %v145_v44, 2 }
  0x46   :  { %v937_v46 = vunpack.c.l.b16 %v639_v36  ;;  %v187_v52 = vadd.f32 %v186_v45, %v185_v35  ;;  %v353_v53 = vadd.f32 %v95_v39, %v89_v38  ;;  %v229_v57 = vadd.f32 %v228_v47, %v227_v40  ;;  %v1918_v40 = vld [vmem:[%s2573_s3 + $0x160] sm:$0xff]  }
  0x47   :  { %v943_v50 = vunpack.c.l.b16 %v645_v42  ;;  %v271_v58 = vadd.f32 %v270_v48, %v269_v41  ;;  %v312_v59 = vrot.slane %v311_v49, 4  ;;  %v147_v1 = vadd.f32 %v146_v51, %v145_v44 }
  0x48   :  { %v960_v54 = vsel %vm959_vm6, %v937_v46, %v958_v43  ;;  %v188_v2 = vrot.slane %v187_v52, 2  ;;  %v354_v3 = vrot.slane %v353_v53, 4  ;;  %v230_v6 = vrot.slane %v229_v57, 2 }
  0x49   :  { %v962_v60 = vsel %vm961_vm7, %v943_v50, %v960_v54  ;;  %v272_v7 = vrot.slane %v271_v58, 2  ;;  %v313_v8 = vadd.f32 %v312_v59, %v311_v49  ;;  %v148_v9 = vrot.slane %v147_v1, 1  ;;  %v1922_v54 = vld [vmem:[%s2573_s3 + $0x158] sm:$0xff]  }
  0x4a   :  { %v998_v4 = vpack.c.b16 %v962_v60, %v962_v60  ;;  %v189_v10 = vadd.f32 %v188_v2, %v187_v52  ;;  %v355_v11 = vadd.f32 %v354_v3, %v353_v53  ;;  %v395_v12 = vadd.f32 %v107_v56, %v101_v55  ;;  %v1919_v53 = vld [vmem:[%s2573_s3 + $0x120] sm:$0xff]   ;;  %v1923_v2 = vld [vmem:[%s2573_s3 + $0x118] sm:$0xff]  }
  0x4b   :  { %v231_v13 = vadd.f32 %v230_v6, %v229_v57  ;;  %v273_v14 = vadd.f32 %v272_v7, %v271_v58  ;;  %v314_v15 = vrot.slane %v313_v8, 2  ;;  %v437_v16 = vadd.f32 %v119_v63, %v113_v62  ;;  %v28_v63 = vld [vmem:[%s2575_s0 + $0x10] sm:$0xff] }
  0x4c   :  { %1331 = vmatmul.mubr.bf16.vlgmr.msra.gmra.mxu1 %v998_v4  ;;  %v149_v18 = vadd.f32 %v148_v9, %v147_v1  ;;  %v190_v19 = vrot.slane %v189_v10, 1  ;;  %v356_v20 = vrot.slane %v355_v11, 2  ;;  %v396_v21 = vrot.slane %v395_v12, 4  ;;  %v34_v1 = vld [vmem:[%s2575_s0 + $0x40] sm:$0xff]  ;;  %v1926_v7 = vld [vmem:[%s2573_s3 + $0x150] sm:$0xff]  }
  0x4d   :  { %1808 = vmatpush3.bf16.msra.mxu1 %v1907_v61  ;;  %v232_v23 = vrot.slane %v231_v13, 1  ;;  %v274_v24 = vrot.slane %v273_v14, 1  ;;  %v315_v25 = vadd.f32 %v314_v15, %v313_v8  ;;  %v438_v26 = vrot.slane %v437_v16, 4 }
  0x4e   :  { %1809 = vmatprep.subr.bf16.mxu1 %v1910_v5  ;;  %v191_v27 = vadd.f32 %v190_v19, %v189_v10  ;;  %v357_v28 = vadd.f32 %v356_v20, %v355_v11  ;;  %v397_v29 = vadd.f32 %v396_v21, %v395_v12  ;;  %v462_v30 = vmul.f32 0.0625, %v149_v18  ;;  %v40_v12 = vld [vmem:[%s2575_s0 + $0x70] sm:$0xff]  ;;  %v58_v18 = vld [vmem:[%s2575_s0 + $0x100] sm:$0xff] }
  0x4f   :  { %v233_v32 = vadd.f32 %v232_v23, %v231_v13  ;;  %v275_v33 = vadd.f32 %v274_v24, %v273_v14  ;;  %v316_v34 = vrot.slane %v315_v25, 1  ;;  %v439_v35 = vadd.f32 %v438_v26, %v437_v16  ;;  %v46_v13 = vld [vmem:[%s2575_s0 + $0xa0] sm:$0xff]  ;;  %v64_v24 = vld [vmem:[%s2575_s0 + $0x130] sm:$0xff] }
  0x50   :  { %v358_v36 = vrot.slane %v357_v28, 1  ;;  %v398_v37 = vrot.slane %v397_v29, 2  ;;  %v468_v38 = vmul.f32 0.0625, %v191_v27  ;;  %v510_v39 = vmul.f32 2.0, %v462_v30  ;;  %v1927_v26 = vld [vmem:[%s2573_s3 + $0x110] sm:$0xff]  }
  0x51   :  { %1810 = vmatpush3.bf16.msra.mxu1 %v1911_v17  ;;  %v317_v41 = vadd.f32 %v316_v34, %v315_v25  ;;  %v440_v42 = vrot.slane %v439_v35, 2  ;;  %v474_v43 = vmul.f32 0.0625, %v233_v32  ;;  %v480_v44 = vmul.f32 0.0625, %v275_v33  ;;  %v52_v17 = vld [vmem:[%s2575_s0 + $0xd0] sm:$0xff]  ;;  %v70_v25 = vld [vmem:[%s2575_s0 + $0x160] sm:$0xff]  ;;  %v1930_v33 = vld [vmem:[%s2573_s3 + $0x148] sm:$0xff]  }
  0x52   :  { %1811 = vmatprep.subr.bf16.mxu1 %v1914_v22  ;;  %v359_v45 = vadd.f32 %v358_v36, %v357_v28  ;;  %v399_v46 = vadd.f32 %v398_v37, %v397_v29  ;;  %v516_v47 = vmul.f32 2.0, %v468_v38  ;;  %v1645_v48 = vadd.f32 -1.0, %v510_v39  ;;  %v76_v30 = vld [vmem:[%s2575_s0 + $0x190] sm:$0xff] }
  0x53   :  { %v441_v49 = vadd.f32 %v440_v42, %v439_v35  ;;  %v486_v50 = vmul.f32 0.0625, %v317_v41  ;;  %v522_v51 = vmul.f32 2.0, %v474_v43  ;;  %v528_v52 = vmul.f32 2.0, %v480_v44  ;;  %v88_v37 = vld [vmem:[%s2575_s0 + $0x1f0] sm:$0xff]  ;;  %v94_v42 = vld [vmem:[%s2575_s0 + $0x220] sm:$0xff] }
  0x54   :  { %v400_v55 = vrot.slane %v399_v46, 1  ;;  %v492_v56 = vmul.f32 0.0625, %v359_v45  ;;  %v1651_v57 = vadd.f32 -1.0, %v516_v47  ;;  %v606_v58 = vpack.c.bf16 %v1645_v48, %v1645_v48 }
  0x55   :  { %1812 = vmatpush3.bf16.msra.mxu1 %v1915_v31  ;;  %v442_v59 = vrot.slane %v441_v49, 1  ;;  %v534_v60 = vmul.f32 2.0, %v486_v50  ;;  %v1657_v61 = vadd.f32 -1.0, %v522_v51  ;;  %v1663_v62 = vadd.f32 -1.0, %v528_v52  ;;  %v82_v31 = vld [vmem:[%s2575_s0 + $0x1c0] sm:$0xff] }
  0x56   :  { %1813 = vmatprep.subr.bf16.mxu1 %v1918_v40  ;;  %v401_v3 = vadd.f32 %v400_v55, %v399_v46  ;;  %v540_v4 = vmul.f32 2.0, %v492_v56  ;;  %v612_v5 = vpack.c.bf16 %v1651_v57, %v1651_v57  ;;  %v904_v6 = vunpack.c.l.b16 %v606_v58  ;;  %v1931_v56 = vld [vmem:[%s2573_s3 + $0x108] sm:$0xff]  }
  0x57   :  { %v443_v8 = vadd.f32 %v442_v59, %v441_v49  ;;  %v1669_v9 = vadd.f32 -1.0, %v534_v60  ;;  %v618_v10 = vpack.c.bf16 %v1657_v61, %v1657_v61  ;;  %v624_v11 = vpack.c.bf16 %v1663_v62, %v1663_v62  ;;  %v1934_v61 = vld [vmem:[%s2573_s3 + $0x140] sm:$0xff]  }
  0x58   :  { %v498_v14 = vmul.f32 0.0625, %v401_v3  ;;  %v1675_v15 = vadd.f32 -1.0, %v540_v4  ;;  %v910_v16 = vunpack.c.l.b16 %v612_v5  ;;  %v136_v19 = vadd.f32 %v34_v1, %v28_v63  ;;  %v100_v4 = vld [vmem:[%s2575_s0 + $0x250] sm:$0xff]  ;;  %v106_v5 = vld [vmem:[%s2575_s0 + $0x280] sm:$0xff] }
  0x59   :  { %1814 = vmatpush3.bf16.msra.mxu1 %v1919_v53  ;;  %v504_v20 = vmul.f32 0.0625, %v443_v8  ;;  %v630_v21 = vpack.c.bf16 %v1669_v9, %v1669_v9  ;;  %v916_v22 = vunpack.c.l.b16 %v618_v10  ;;  %v922_v23 = vunpack.c.l.b16 %v624_v11  ;;  %v112_v10 = vld [vmem:[%s2575_s0 + $0x2b0] sm:$0xff]  ;;  %v118_v11 = vld [vmem:[%s2575_s0 + $0x2e0] sm:$0xff] }
  0x5a   :  { %1815 = vmatprep.subr.bf16.mxu1 %v1922_v54  ;;  %v546_v27 = vmul.f32 2.0, %v498_v14  ;;  %v636_v28 = vpack.c.bf16 %v1675_v15, %v1675_v15  ;;  %v977_v29 = vsel %vm949_vm1, %v910_v16, %v904_v6  ;;  %v137_v32 = vrot.slane %v136_v19, 4  ;;  %v1935_v16 = vld [vmem:[%s2573_s3 + $0x100] sm:$0xff]  }
  0x5b   :  { %v552_v34 = vmul.f32 2.0, %v504_v20  ;;  %v928_v35 = vunpack.c.l.b16 %v630_v21  ;;  %v978_v36 = vsel %vm951_vm2, %v916_v22, %v977_v29  ;;  %v178_v38 = vadd.f32 %v46_v13, %v40_v12 }
  0x5c   :  { %v1681_v39 = vadd.f32 -1.0, %v546_v27  ;;  %v934_v40 = vunpack.c.l.b16 %v636_v28  ;;  %v979_v41 = vsel %vm953_vm3, %v922_v23, %v978_v36  ;;  %v138_v43 = vadd.f32 %v137_v32, %v136_v19 }
  0x5d   :  { %1816 = vmatpush3.bf16.msra.mxu1 %v1923_v2  ;;  %v1687_v44 = vadd.f32 -1.0, %v552_v34  ;;  %v980_v45 = vsel %vm955_vm4, %v928_v35, %v979_v41  ;;  %v179_v46 = vrot.slane %v178_v38, 4  ;;  %v220_v47 = vadd.f32 %v58_v18, %v52_v17 }
  0x5e   :  { %1817 = vmatprep.subr.bf16.mxu1 %v1926_v7  ;;  %v642_v48 = vpack.c.bf16 %v1681_v39, %v1681_v39  ;;  %v981_v49 = vsel %vm957_vm5, %v934_v40, %v980_v45  ;;  %v139_v50 = vrot.slane %v138_v43, 2  ;;  %v262_v51 = vadd.f32 %v70_v25, %v64_v24 }
  0x5f   :  { %v648_v52 = vpack.c.bf16 %v1687_v44, %v1687_v44  ;;  %v180_v53 = vadd.f32 %v179_v46, %v178_v38  ;;  %v221_v54 = vrot.slane %v220_v47, 4  ;;  %v304_v55 = vadd.f32 %v82_v31, %v76_v30 }
  0x60   :  { %v940_v57 = vunpack.c.l.b16 %v642_v48  ;;  %v140_v58 = vadd.f32 %v139_v50, %v138_v43  ;;  %v263_v59 = vrot.slane %v262_v51, 4  ;;  %v346_v60 = vadd.f32 %v94_v42, %v88_v37 }
  0x61   :  { %1818 = vmatpush3.bf16.msra.mxu1 %v1927_v26  ;;  %v946_v62 = vunpack.c.l.b16 %v648_v52  ;;  %v181_v63 = vrot.slane %v180_v53, 2  ;;  %v222_v1 = vadd.f32 %v221_v54, %v220_v47  ;;  %v305_v2 = vrot.slane %v304_v55, 4 }
  0x62   :  { %1819 = vmatprep.subr.bf16.mxu1 %v1930_v33  ;;  %v982_v3 = vsel %vm959_vm6, %v940_v57, %v981_v49  ;;  %v141_v6 = vrot.slane %v140_v58, 1  ;;  %v264_v7 = vadd.f32 %v263_v59, %v262_v51  ;;  %v347_v8 = vrot.slane %v346_v60, 4  ;;  %v37_v57 = vld [vmem:[%s2575_s0 + $0x58] sm:$0xff] }
  0x63   :  { %v983_v9 = vsel %vm961_vm7, %v946_v62, %v982_v3  ;;  %v182_v12 = vadd.f32 %v181_v63, %v180_v53  ;;  %v223_v13 = vrot.slane %v222_v1, 2  ;;  %v306_v14 = vadd.f32 %v305_v2, %v304_v55 }
  0x64   :  { %v1001_v15 = vpack.c.b16 %v983_v9, %v983_v9  ;;  %v142_v17 = vadd.f32 %v141_v6, %v140_v58  ;;  %v265_v18 = vrot.slane %v264_v7, 2  ;;  %v348_v19 = vadd.f32 %v347_v8, %v346_v60 }
  0x65   :  { %1820 = vmatpush3.bf16.msra.mxu1 %v1931_v56  ;;  %v183_v20 = vrot.slane %v182_v12, 1  ;;  %v224_v21 = vadd.f32 %v223_v13, %v222_v1  ;;  %v307_v22 = vrot.slane %v306_v14, 2  ;;  %v388_v23 = vadd.f32 %v106_v5, %v100_v4  ;;  %v31_v56 = vld [vmem:[%s2575_s0 + $0x28] sm:$0xff] }
  0x66   :  { %1821 = vmatprep.subr.bf16.mxu1 %v1934_v61  ;;  %1370 = vmatprep.mubr.bf16.mxu0 %v1001_v15  ;;  %v266_v24 = vadd.f32 %v265_v18, %v264_v7  ;;  %v349_v25 = vrot.slane %v348_v19, 2  ;;  %v430_v26 = vadd.f32 %v118_v11, %v112_v10  ;;  %v461_v27 = vmul.f32 0.0625, %v142_v17  ;;  %v49_v15 = vld [vmem:[%s2575_s0 + $0xb8] sm:$0xff] }
  0x67   :  { %v184_v28 = vadd.f32 %v183_v20, %v182_v12  ;;  %v225_v29 = vrot.slane %v224_v21, 1  ;;  %v308_v30 = vadd.f32 %v307_v22, %v306_v14  ;;  %v389_v31 = vrot.slane %v388_v23, 4  ;;  %v43_v14 = vld [vmem:[%s2575_s0 + $0x88] sm:$0xff] }
  0x68   :  { %v267_v32 = vrot.slane %v266_v24, 1  ;;  %v350_v33 = vadd.f32 %v349_v25, %v348_v19  ;;  %v431_v34 = vrot.slane %v430_v26, 4  ;;  %v509_v35 = vmul.f32 2.0, %v461_v27  ;;  %v61_v25 = vld [vmem:[%s2575_s0 + $0x118] sm:$0xff] }
  0x69   :  { %1822 = vmatpush3.bf16.msra.mxu1 %v1935_v16  ;;  %v226_v36 = vadd.f32 %v225_v29, %v224_v21  ;;  %v309_v37 = vrot.slane %v308_v30, 1  ;;  %v390_v38 = vadd.f32 %v389_v31, %v388_v23  ;;  %v467_v39 = vmul.f32 0.0625, %v184_v28  ;;  %v73_v31 = vld [vmem:[%s2575_s0 + $0x178] sm:$0xff] }
  0x6a   :  { %v268_v40 = vadd.f32 %v267_v32, %v266_v24  ;;  %v351_v41 = vrot.slane %v350_v33, 1  ;;  %v432_v42 = vadd.f32 %v431_v34, %v430_v26  ;;  %v1644_v43 = vadd.f32 -1.0, %v509_v35  ;;  %v55_v24 = vld [vmem:[%s2575_s0 + $0xe8] sm:$0xff] }
  0x6b   :  { %v310_v44 = vadd.f32 %v309_v37, %v308_v30  ;;  %v391_v45 = vrot.slane %v390_v38, 2  ;;  %v473_v46 = vmul.f32 0.0625, %v226_v36  ;;  %v515_v47 = vmul.f32 2.0, %v467_v39  ;;  %v67_v30 = vld [vmem:[%s2575_s0 + $0x148] sm:$0xff]  ;;  %v85_v37 = vld [vmem:[%s2575_s0 + $0x1d8] sm:$0xff] }
  0x6c   :  { %v352_v48 = vadd.f32 %v351_v41, %v350_v33  ;;  %v433_v49 = vrot.slane %v432_v42, 2  ;;  %v479_v50 = vmul.f32 0.0625, %v268_v40  ;;  %v605_v51 = vpack.c.bf16 %v1644_v43, %v1644_v43  ;;  %v79_v36 = vld [vmem:[%s2575_s0 + $0x1a8] sm:$0xff] }
  0x6d   :  { %v392_v52 = vadd.f32 %v391_v45, %v390_v38  ;;  %v485_v53 = vmul.f32 0.0625, %v310_v44  ;;  %v521_v54 = vmul.f32 2.0, %v473_v46  ;;  %v1650_v55 = vadd.f32 -1.0, %v515_v47  ;;  %v91_v41 = vld [vmem:[%s2575_s0 + $0x208] sm:$0xff] }
  0x6e   :  { %v434_v58 = vadd.f32 %v433_v49, %v432_v42  ;;  %v491_v59 = vmul.f32 0.0625, %v352_v48  ;;  %v527_v60 = vmul.f32 2.0, %v479_v50  ;;  %v903_v61 = vunpack.c.l.b16 %v605_v51  ;;  %v97_v42 = vld [vmem:[%s2575_s0 + $0x238] sm:$0xff] }
  0x6f   :  { %v393_v62 = vrot.slane %v392_v52, 1  ;;  %v533_v63 = vmul.f32 2.0, %v485_v53  ;;  %v1656_v1 = vadd.f32 -1.0, %v521_v54  ;;  %v611_v2 = vpack.c.bf16 %v1650_v55, %v1650_v55 }
  0x70   :  { %v435_v3 = vrot.slane %v434_v58, 1  ;;  %v539_v4 = vmul.f32 2.0, %v491_v59  ;;  %v1662_v5 = vadd.f32 -1.0, %v527_v60  ;;  %v157_v6 = vadd.f32 %v37_v57, %v31_v56  ;;  %v109_v59 = vld [vmem:[%s2575_s0 + $0x298] sm:$0xff] }
  0x71   :  { %v394_v7 = vadd.f32 %v393_v62, %v392_v52  ;;  %v1668_v8 = vadd.f32 -1.0, %v533_v63  ;;  %v617_v9 = vpack.c.bf16 %v1656_v1, %v1656_v1  ;;  %v909_v10 = vunpack.c.l.b16 %v611_v2 }
  0x72   :  { %v436_v11 = vadd.f32 %v435_v3, %v434_v58  ;;  %v1674_v12 = vadd.f32 -1.0, %v539_v4  ;;  %v623_v13 = vpack.c.bf16 %v1662_v5, %v1662_v5  ;;  %v158_v16 = vrot.slane %v157_v6, 4  ;;  %v103_v58 = vld [vmem:[%s2575_s0 + $0x268] sm:$0xff] }
  0x73   :  { %v497_v17 = vmul.f32 0.0625, %v394_v7  ;;  %v629_v18 = vpack.c.bf16 %v1668_v8, %v1668_v8  ;;  %v915_v19 = vunpack.c.l.b16 %v617_v9  ;;  %v970_v20 = vsel %vm949_vm1, %v909_v10, %v903_v61  ;;  %v115_v5 = vld [vmem:[%s2575_s0 + $0x2c8] sm:$0xff] }
  0x74   :  { %v503_v21 = vmul.f32 0.0625, %v436_v11  ;;  %v635_v22 = vpack.c.bf16 %v1674_v12, %v1674_v12  ;;  %v921_v23 = vunpack.c.l.b16 %v623_v13  ;;  %v159_v26 = vadd.f32 %v158_v16, %v157_v6  ;;  %v121_v6 = vld [vmem:[%s2575_s0 + $0x2f8] sm:$0xff] }
  0x75   :  { %v545_v27 = vmul.f32 2.0, %v497_v17  ;;  %v927_v28 = vunpack.c.l.b16 %v629_v18  ;;  %v971_v29 = vsel %vm951_vm2, %v915_v19, %v970_v20  ;;  %v199_v32 = vadd.f32 %v49_v15, %v43_v14  ;;  %v1936_v14 = vld [vmem:[%s2576_s5 + $0x38] sm:$0xff]  }
  0x76   :  { %v551_v33 = vmul.f32 2.0, %v503_v21  ;;  %v933_v34 = vunpack.c.l.b16 %v635_v22  ;;  %v972_v35 = vsel %vm953_vm3, %v921_v23, %v971_v29  ;;  %v160_v38 = vrot.slane %v159_v26, 2 }
  0x77   :  { %v1680_v39 = vadd.f32 -1.0, %v545_v27  ;;  %v973_v40 = vsel %vm955_vm4, %v927_v28, %v972_v35  ;;  %v200_v43 = vrot.slane %v199_v32, 4  ;;  %v241_v44 = vadd.f32 %v61_v25, %v55_v24 }
  0x78   :  { %v1686_v45 = vadd.f32 -1.0, %v551_v33  ;;  %v974_v46 = vsel %vm957_vm5, %v933_v34, %v973_v40  ;;  %v161_v47 = vadd.f32 %v160_v38, %v159_v26  ;;  %v283_v48 = vadd.f32 %v73_v31, %v67_v30  ;;  %v1937_v31 = vld [vmem:[%s2576_s5 + $0x30] sm:$0xff]  }
  0x79   :  { %v641_v49 = vpack.c.bf16 %v1680_v39, %v1680_v39  ;;  %v201_v50 = vadd.f32 %v200_v43, %v199_v32  ;;  %v242_v51 = vrot.slane %v241_v44, 4  ;;  %v325_v52 = vadd.f32 %v85_v37, %v79_v36 }
  0x7a   :  { %v647_v53 = vpack.c.bf16 %v1686_v45, %v1686_v45  ;;  %v162_v54 = vrot.slane %v161_v47, 1  ;;  %v284_v55 = vrot.slane %v283_v48, 4  ;;  %v367_v56 = vadd.f32 %v97_v42, %v91_v41 }
  0x7b   :  { %v939_v57 = vunpack.c.l.b16 %v641_v49  ;;  %v202_v60 = vrot.slane %v201_v50, 2  ;;  %v243_v61 = vadd.f32 %v242_v51, %v241_v44  ;;  %v326_v62 = vrot.slane %v325_v52, 4 }
  0x7c   :  { %v945_v63 = vunpack.c.l.b16 %v647_v53  ;;  %v163_v1 = vadd.f32 %v162_v54, %v161_v47  ;;  %v285_v2 = vadd.f32 %v284_v55, %v283_v48  ;;  %v368_v3 = vrot.slane %v367_v56, 4  ;;  %v1938_v48 = vld [vmem:[%s2576_s5 + $0x28] sm:$0xff]  }
  0x7d   :  { %v975_v4 = vsel %vm959_vm6, %v939_v57, %v974_v46  ;;  %v203_v7 = vadd.f32 %v202_v60, %v201_v50  ;;  %v244_v8 = vrot.slane %v243_v61, 2  ;;  %v327_v9 = vadd.f32 %v326_v62, %v325_v52  ;;  %v30_v57 = vld [vmem:[%s2575_s0 + $0x20] sm:$0xff] }
  0x7e   :  { %v976_v10 = vsel %vm961_vm7, %v945_v63, %v975_v4  ;;  %v286_v11 = vrot.slane %v285_v2, 2  ;;  %v369_v12 = vadd.f32 %v368_v3, %v367_v56  ;;  %v409_v13 = vadd.f32 %v109_v59, %v103_v58  ;;  %v36_v58 = vld [vmem:[%s2575_s0 + $0x50] sm:$0xff]  ;;  %v1939_v4 = vld [vmem:[%s2576_s5 + $0x20] sm:$0xff]  }
  0x7f   :  { %v1000_v15 = vpack.c.b16 %v976_v10, %v976_v10  ;;  %v204_v16 = vrot.slane %v203_v7, 1  ;;  %v245_v17 = vadd.f32 %v244_v8, %v243_v61  ;;  %v328_v18 = vrot.slane %v327_v9, 2 }
  0x80   :  { %v287_v19 = vadd.f32 %v286_v11, %v285_v2  ;;  %v370_v20 = vrot.slane %v369_v12, 2  ;;  %v410_v21 = vrot.slane %v409_v13, 4  ;;  %v451_v22 = vadd.f32 %v121_v6, %v115_v5 }
  0x81   :  { %1371 = vmatmul.mubr.bf16.vlgmr.msra.gmra.mxu0 %v1000_v15  ;;  %v205_v23 = vadd.f32 %v204_v16, %v203_v7  ;;  %v246_v24 = vrot.slane %v245_v17, 1  ;;  %v329_v25 = vadd.f32 %v328_v18, %v327_v9  ;;  %v464_v26 = vmul.f32 0.0625, %v163_v1 }
  0x82   :  { %v288_v27 = vrot.slane %v287_v19, 1  ;;  %v371_v28 = vadd.f32 %v370_v20, %v369_v12  ;;  %v411_v29 = vadd.f32 %v410_v21, %v409_v13  ;;  %v452_v30 = vrot.slane %v451_v22, 4  ;;  %1859 = vmatpush3.bf16.msra.mxu0 %v1936_v14  ;;  %1874 = vmatprep.mubr.msk.bf16.mxu0 %vm1949_vm0, %v1948_v0  ;;  %v42_v13 = vld [vmem:[%s2575_s0 + $0x80] sm:$0xff]  ;;  %v48_v14 = vld [vmem:[%s2575_s0 + $0xb0] sm:$0xff] }
  0x83   :  { %v247_v32 = vadd.f32 %v246_v24, %v245_v17  ;;  %v330_v33 = vrot.slane %v329_v25, 1  ;;  %v470_v34 = vmul.f32 0.0625, %v205_v23  ;;  %v512_v35 = vmul.f32 2.0, %v464_v26  ;;  %1860 = vmatprep.subr.bf16.mxu0 %v1948_v0  ;;  %v54_v23 = vld [vmem:[%s2575_s0 + $0xe0] sm:$0xff]  ;;  %v60_v24 = vld [vmem:[%s2575_s0 + $0x110] sm:$0xff] }
  0x84   :  { %v289_v36 = vadd.f32 %v288_v27, %v287_v19  ;;  %v372_v37 = vrot.slane %v371_v28, 1  ;;  %v412_v38 = vrot.slane %v411_v29, 2  ;;  %v453_v39 = vadd.f32 %v452_v30, %v451_v22 }
  0x85   :  { %v331_v40 = vadd.f32 %v330_v33, %v329_v25  ;;  %v476_v41 = vmul.f32 0.0625, %v247_v32  ;;  %v518_v42 = vmul.f32 2.0, %v470_v34  ;;  %v1647_v43 = vadd.f32 -1.0, %v512_v35  ;;  %v1940_v25 = vld [vmem:[%s2576_s5 + $0x18] sm:$0xff]  }
  0x86   :  { %v373_v44 = vadd.f32 %v372_v37, %v371_v28  ;;  %v413_v45 = vadd.f32 %v412_v38, %v411_v29  ;;  %v454_v46 = vrot.slane %v453_v39, 2  ;;  %v482_v47 = vmul.f32 0.0625, %v289_v36  ;;  %1861 = vmatpush3.bf16.msra.mxu0 %v1937_v31  ;;  %v66_v28 = vld [vmem:[%s2575_s0 + $0x140] sm:$0xff]  ;;  %v72_v29 = vld [vmem:[%s2575_s0 + $0x170] sm:$0xff] }
  0x87   :  { %v488_v49 = vmul.f32 0.0625, %v331_v40  ;;  %v524_v50 = vmul.f32 2.0, %v476_v41  ;;  %v1653_v51 = vadd.f32 -1.0, %v518_v42  ;;  %v608_v52 = vpack.c.bf16 %v1647_v43, %v1647_v43  ;;  %1862 = vmatprep.subr.bf16.mxu0 %v1948_v0  ;;  %v78_v36 = vld [vmem:[%s2575_s0 + $0x1a0] sm:$0xff]  ;;  %v84_v37 = vld [vmem:[%s2575_s0 + $0x1d0] sm:$0xff] }
  0x88   :  { %v414_v53 = vrot.slane %v413_v45, 1  ;;  %v455_v54 = vadd.f32 %v454_v46, %v453_v39  ;;  %v494_v55 = vmul.f32 0.0625, %v373_v44  ;;  %v530_v56 = vmul.f32 2.0, %v482_v47  ;;  %v90_v39 = vld [vmem:[%s2575_s0 + $0x200] sm:$0xff]  ;;  %v96_v40 = vld [vmem:[%s2575_s0 + $0x230] sm:$0xff] }
  0x89   :  { %v536_v59 = vmul.f32 2.0, %v488_v49  ;;  %v1659_v60 = vadd.f32 -1.0, %v524_v50  ;;  %v614_v61 = vpack.c.bf16 %v1653_v51, %v1653_v51  ;;  %v906_v62 = vunpack.c.l.b16 %v608_v52 }
  0x8a   :  { %v415_v63 = vadd.f32 %v414_v53, %v413_v45  ;;  %v456_v1 = vrot.slane %v455_v54, 1  ;;  %v542_v2 = vmul.f32 2.0, %v494_v55  ;;  %v1665_v3 = vadd.f32 -1.0, %v530_v56  ;;  %1863 = vmatpush3.bf16.msra.mxu0 %v1938_v48  ;;  %v1941_v48 = vld [vmem:[%s2576_s5 + $0x10] sm:$0xff]  }
  0x8b   :  { %v1671_v5 = vadd.f32 -1.0, %v536_v59  ;;  %v620_v6 = vpack.c.bf16 %v1659_v60, %v1659_v60  ;;  %v912_v7 = vunpack.c.l.b16 %v614_v61  ;;  %v150_v8 = vadd.f32 %v36_v58, %v30_v57  ;;  %1864 = vmatprep.subr.bf16.mxu0 %v1948_v0  ;;  %v102_v57 = vld [vmem:[%s2575_s0 + $0x260] sm:$0xff]  ;;  %v108_v58 = vld [vmem:[%s2575_s0 + $0x290] sm:$0xff] }
  0x8c   :  { %v457_v9 = vadd.f32 %v456_v1, %v455_v54  ;;  %v500_v10 = vmul.f32 0.0625, %v415_v63  ;;  %v1677_v11 = vadd.f32 -1.0, %v542_v2  ;;  %v626_v12 = vpack.c.bf16 %v1665_v3, %v1665_v3 }
  0x8d   :  { %v632_v15 = vpack.c.bf16 %v1671_v5, %v1671_v5  ;;  %v918_v16 = vunpack.c.l.b16 %v620_v6  ;;  %v991_v17 = vsel %vm949_vm1, %v912_v7, %v906_v62  ;;  %v151_v18 = vrot.slane %v150_v8, 4  ;;  %v114_v5 = vld [vmem:[%s2575_s0 + $0x2c0] sm:$0xff]  ;;  %v120_v6 = vld [vmem:[%s2575_s0 + $0x2f0] sm:$0xff] }
  0x8e   :  { %v506_v19 = vmul.f32 0.0625, %v457_v9  ;;  %v548_v20 = vmul.f32 2.0, %v500_v10  ;;  %v638_v21 = vpack.c.bf16 %v1677_v11, %v1677_v11  ;;  %v924_v22 = vunpack.c.l.b16 %v626_v12  ;;  %1865 = vmatpush3.bf16.msra.mxu0 %v1939_v4  ;;  %v1942_v4 = vld [vmem:[%s2576_s5 + $0x8] sm:$0xff]  }
  0x8f   :  { %v930_v26 = vunpack.c.l.b16 %v632_v15  ;;  %v992_v27 = vsel %vm951_vm2, %v918_v16, %v991_v17  ;;  %v152_v30 = vadd.f32 %v151_v18, %v150_v8  ;;  %v192_v31 = vadd.f32 %v48_v14, %v42_v13  ;;  %1866 = vmatprep.subr.bf16.mxu0 %v1948_v0 }
  0x90   :  { %v554_v32 = vmul.f32 2.0, %v506_v19  ;;  %v1683_v33 = vadd.f32 -1.0, %v548_v20  ;;  %v936_v34 = vunpack.c.l.b16 %v638_v21  ;;  %v993_v35 = vsel %vm953_vm3, %v924_v22, %v992_v27 }
  0x91   :  { %v994_v38 = vsel %vm955_vm4, %v930_v26, %v993_v35  ;;  %v153_v41 = vrot.slane %v152_v30, 2  ;;  %v193_v42 = vrot.slane %v192_v31, 4  ;;  %v234_v43 = vadd.f32 %v60_v24, %v54_v23  ;;  %v1943_v23 = vld [vmem:[%s2576_s5] sm:$0xff]  }
  0x92   :  { %v1689_v44 = vadd.f32 -1.0, %v554_v32  ;;  %v644_v45 = vpack.c.bf16 %v1683_v33, %v1683_v33  ;;  %v995_v46 = vsel %vm957_vm5, %v936_v34, %v994_v38  ;;  %v276_v47 = vadd.f32 %v72_v29, %v66_v28  ;;  %1867 = vmatpush3.bf16.msra.mxu0 %v1940_v25 }
  0x93   :  { %v154_v49 = vadd.f32 %v153_v41, %v152_v30  ;;  %v194_v50 = vadd.f32 %v193_v42, %v192_v31  ;;  %v235_v51 = vrot.slane %v234_v43, 4  ;;  %v318_v52 = vadd.f32 %v84_v37, %v78_v36  ;;  %1868 = vmatprep.subr.bf16.mxu0 %v1948_v0 }
  0x94   :  { %v650_v53 = vpack.c.bf16 %v1689_v44, %v1689_v44  ;;  %v942_v54 = vunpack.c.l.b16 %v644_v45  ;;  %v277_v55 = vrot.slane %v276_v47, 4  ;;  %v360_v56 = vadd.f32 %v96_v40, %v90_v39 }
  0x95   :  { %v155_v59 = vrot.slane %v154_v49, 1  ;;  %v195_v60 = vrot.slane %v194_v50, 2  ;;  %v236_v61 = vadd.f32 %v235_v51, %v234_v43  ;;  %v319_v62 = vrot.slane %v318_v52, 4 }
  0x96   :  { %v948_v63 = vunpack.c.l.b16 %v650_v53  ;;  %v996_v1 = vsel %vm959_vm6, %v942_v54, %v995_v46  ;;  %v278_v2 = vadd.f32 %v277_v55, %v276_v47  ;;  %v361_v3 = vrot.slane %v360_v56, 4  ;;  %1869 = vmatpush3.bf16.msra.mxu0 %v1941_v48  ;;  %v1425_v55 = vld [vmem:[%s2577_s2] sm:$0xff] }
  0x97   :  { %v156_v7 = vadd.f32 %v155_v59, %v154_v49  ;;  %v196_v8 = vadd.f32 %v195_v60, %v194_v50  ;;  %v237_v9 = vrot.slane %v236_v61, 2  ;;  %v320_v10 = vadd.f32 %v319_v62, %v318_v52  ;;  %1870 = vmatprep.subr.bf16.mxu0 %v1948_v0 }
  0x98   :  { %v997_v11 = vsel %vm961_vm7, %v948_v63, %v996_v1  ;;  %v279_v12 = vrot.slane %v278_v2, 2  ;;  %v362_v13 = vadd.f32 %v361_v3, %v360_v56  ;;  %v402_v14 = vadd.f32 %v108_v58, %v102_v57 }
  0x99   :  { %v1003_v15 = vpack.c.b16 %v997_v11, %v997_v11  ;;  %v197_v16 = vrot.slane %v196_v8, 1  ;;  %v238_v17 = vadd.f32 %v237_v9, %v236_v61  ;;  %v321_v18 = vrot.slane %v320_v10, 2  ;;  %v1426_v9 = vld [vmem:[%s2577_s2 + $0x8] sm:$0xff] }
  0x9a   :  { %v280_v19 = vadd.f32 %v279_v12, %v278_v2  ;;  %v363_v20 = vrot.slane %v362_v13, 2  ;;  %v403_v21 = vrot.slane %v402_v14, 4  ;;  %v444_v22 = vadd.f32 %v120_v6, %v114_v5  ;;  %1871 = vmatpush3.bf16.msra.mxu0 %v1942_v4 }
  0x9b   :  { %1410 = vmatprep.mubr.bf16.mxu1 %v1003_v15  ;;  %v198_v24 = vadd.f32 %v197_v16, %v196_v8  ;;  %v239_v25 = vrot.slane %v238_v17, 1  ;;  %v322_v26 = vadd.f32 %v321_v18, %v320_v10  ;;  %v463_v27 = vmul.f32 0.0625, %v156_v7  ;;  %1872 = vmatprep.subr.bf16.mxu0 %v1948_v0  ;;  %v1427_v18 = vld [vmem:[%s2577_s2 + $0x10] sm:$0xff] }
  0x9c   :  { %v281_v28 = vrot.slane %v280_v19, 1  ;;  %v364_v29 = vadd.f32 %v363_v20, %v362_v13  ;;  %v404_v30 = vadd.f32 %v403_v21, %v402_v14  ;;  %v445_v31 = vrot.slane %v444_v22, 4  ;;  %v1428_v21 = vld [vmem:[%s2577_s2 + $0x18] sm:$0xff] }
  0x9d   :  { %v240_v32 = vadd.f32 %v239_v25, %v238_v17  ;;  %v323_v33 = vrot.slane %v322_v26, 1  ;;  %v469_v34 = vmul.f32 0.0625, %v198_v24  ;;  %v511_v35 = vmul.f32 2.0, %v463_v27 }
  0x9e   :  { %v282_v36 = vadd.f32 %v281_v28, %v280_v19  ;;  %v365_v37 = vrot.slane %v364_v29, 1  ;;  %v405_v38 = vrot.slane %v404_v30, 2  ;;  %v446_v39 = vadd.f32 %v445_v31, %v444_v22  ;;  %1873 = vmatpush3.bf16.msra.mxu0 %v1943_v23  ;;  %v1429_v28 = vld [vmem:[%s2577_s2 + $0x20] sm:$0xff] }
  0x9f   :  { %v324_v40 = vadd.f32 %v323_v33, %v322_v26  ;;  %v475_v41 = vmul.f32 0.0625, %v240_v32  ;;  %v517_v42 = vmul.f32 2.0, %v469_v34  ;;  %v1646_v43 = vadd.f32 -1.0, %v511_v35 }
  0xa0   :  { %v366_v44 = vadd.f32 %v365_v37, %v364_v29  ;;  %v406_v45 = vadd.f32 %v405_v38, %v404_v30  ;;  %v447_v0 = vrot.slane %v446_v39, 2  ;;  %v481_v46 = vmul.f32 0.0625, %v282_v36  ;;  %v1430_v30 = vld [vmem:[%s2577_s2 + $0x28] sm:$0xff] }
  0xa1   :  { %v487_v47 = vmul.f32 0.0625, %v324_v40  ;;  %v523_v48 = vmul.f32 2.0, %v475_v41  ;;  %v1652_v49 = vadd.f32 -1.0, %v517_v42  ;;  %v607_v50 = vpack.c.bf16 %v1646_v43, %v1646_v43 }
  0xa2   :  { %v407_v51 = vrot.slane %v406_v45, 1  ;;  %v448_v52 = vadd.f32 %v447_v0, %v446_v39  ;;  %v493_v53 = vmul.f32 0.0625, %v366_v44  ;;  %v529_v54 = vmul.f32 2.0, %v481_v46  ;;  %v1431_v44 = vld [vmem:[%s2577_s2 + $0x30] sm:$0xff]  ;;  %v1432_v46 = vld [vmem:[%s2577_s2 + $0x38] sm:$0xff] }
  0xa3   :  { %v535_v56 = vmul.f32 2.0, %v487_v47  ;;  %v1658_v57 = vadd.f32 -1.0, %v523_v48  ;;  %v613_v58 = vpack.c.bf16 %v1652_v49, %v1652_v49  ;;  %v905_v59 = vunpack.c.l.b16 %v607_v50 }
  0xa4   :  { %v408_v60 = vadd.f32 %v407_v51, %v406_v45  ;;  %v449_v61 = vrot.slane %v448_v52, 1  ;;  %v541_v62 = vmul.f32 2.0, %v493_v53  ;;  %v1664_v63 = vadd.f32 -1.0, %v529_v54 }
  0xa5   :  { %v1670_v1 = vadd.f32 -1.0, %v535_v56  ;;  %v619_v2 = vpack.c.bf16 %v1658_v57, %v1658_v57  ;;  %v911_v3 = vunpack.c.l.b16 %v613_v58  ;;  %v1433_v4 = vrot.slane %v1425_v55, 4 }
  0xa6   :  { %v450_v5 = vadd.f32 %v449_v61, %v448_v52  ;;  %v499_v6 = vmul.f32 0.0625, %v408_v60  ;;  %v1676_v7 = vadd.f32 -1.0, %v541_v62  ;;  %v625_v8 = vpack.c.bf16 %v1664_v63, %v1664_v63 }
  0xa7   :  { %v631_v10 = vpack.c.bf16 %v1670_v1, %v1670_v1  ;;  %v917_v11 = vunpack.c.l.b16 %v619_v2  ;;  %v984_v12 = vsel %vm949_vm1, %v911_v3, %v905_v59  ;;  %v1434_v13 = vadd.f32 %v1433_v4, %v1425_v55 }
  0xa8   :  { %v505_v14 = vmul.f32 0.0625, %v450_v5  ;;  %v547_v15 = vmul.f32 2.0, %v499_v6  ;;  %v637_v16 = vpack.c.bf16 %v1676_v7, %v1676_v7  ;;  %v923_v17 = vunpack.c.l.b16 %v625_v8 }
  0xa9   :  { %v929_v19 = vunpack.c.l.b16 %v631_v10  ;;  %v985_v20 = vsel %vm951_vm2, %v917_v11, %v984_v12  ;;  %v1435_v22 = vrot.slane %v1434_v13, 2  ;;  %v1439_v23 = vrot.slane %v1426_v9, 4 }
  0xaa   :  { %v553_v24 = vmul.f32 2.0, %v505_v14  ;;  %v1682_v25 = vadd.f32 -1.0, %v547_v15  ;;  %v935_v26 = vunpack.c.l.b16 %v637_v16  ;;  %v986_v27 = vsel %vm953_vm3, %v923_v17, %v985_v20 }
  0xab   :  { %v987_v29 = vsel %vm955_vm4, %v929_v19, %v986_v27  ;;  %v1436_v31 = vadd.f32 %v1435_v22, %v1434_v13  ;;  %v1440_v32 = vadd.f32 %v1439_v23, %v1426_v9  ;;  %v1445_v33 = vrot.slane %v1427_v18, 4 }
  0xac   :  { %v1688_v34 = vadd.f32 -1.0, %v553_v24  ;;  %v643_v35 = vpack.c.bf16 %v1682_v25, %v1682_v25  ;;  %v988_v36 = vsel %vm957_vm5, %v935_v26, %v987_v29  ;;  %v1451_v37 = vrot.slane %v1428_v21, 4 }
  0xad   :  { %v1437_v38 = vrot.slane %v1436_v31, 1  ;;  %v1441_v39 = vrot.slane %v1440_v32, 2  ;;  %v1446_v40 = vadd.f32 %v1445_v33, %v1427_v18  ;;  %v1457_v41 = vrot.slane %v1429_v28, 4 }
  0xae   :  { %v649_v42 = vpack.c.bf16 %v1688_v34, %v1688_v34  ;;  %v941_v43 = vunpack.c.l.b16 %v643_v35  ;;  %v1452_v45 = vadd.f32 %v1451_v37, %v1428_v21  ;;  %v1463_v0 = vrot.slane %v1430_v30, 4 }
  0xaf   :  { %v1438_v47 = vadd.f32 %v1437_v38, %v1436_v31  ;;  %v1442_v48 = vadd.f32 %v1441_v39, %v1440_v32  ;;  %v1447_v49 = vrot.slane %v1446_v40, 2  ;;  %v1458_v50 = vadd.f32 %v1457_v41, %v1429_v28 }
  0xb0   :  { %v947_v51 = vunpack.c.l.b16 %v649_v42  ;;  %v989_v52 = vsel %vm959_vm6, %v941_v43, %v988_v36  ;;  %v1453_v53 = vrot.slane %v1452_v45, 2  ;;  %v1464_v54 = vadd.f32 %v1463_v0, %v1430_v30 }
  0xb1   :  { %v1443_v55 = vrot.slane %v1442_v48, 1  ;;  %v1448_v56 = vadd.f32 %v1447_v49, %v1446_v40  ;;  %v1459_v57 = vrot.slane %v1458_v50, 2  ;;  %v1469_v58 = vrot.slane %v1431_v44, 4 }
  0xb2   :  { %v990_v59 = vsel %vm961_vm7, %v947_v51, %v989_v52  ;;  %v1454_v60 = vadd.f32 %v1453_v53, %v1452_v45  ;;  %v1465_v61 = vrot.slane %v1464_v54, 2  ;;  %v1475_v62 = vrot.slane %v1432_v46, 4 }
  0xb3   :  { %v1002_v63 = vpack.c.b16 %v990_v59, %v990_v59  ;;  %v1444_v1 = vadd.f32 %v1443_v55, %v1442_v48  ;;  %v1449_v2 = vrot.slane %v1448_v56, 1  ;;  %v1460_v3 = vadd.f32 %v1459_v57, %v1458_v50 }
  0xb4   :  { %v1455_v4 = vrot.slane %v1454_v60, 1  ;;  %v1466_v5 = vadd.f32 %v1465_v61, %v1464_v54  ;;  %v1470_v6 = vadd.f32 %v1469_v58, %v1431_v44  ;;  %v1476_v7 = vadd.f32 %v1475_v62, %v1432_v46 }
  0xb5   :  { %1411 = vmatmul.mubr.bf16.vlgmr.msra.gmra.mxu1 %v1002_v63  ;;  %v1450_v8 = vadd.f32 %v1449_v2, %v1448_v56  ;;  %v1461_v9 = vrot.slane %v1460_v3, 1  ;;  %v1482_v10 = vmul.f32 0.125, %v1438_v47  ;;  %v1483_v11 = vmul.f32 0.125, %v1444_v1 }
  0xb6   :  { %v1456_v12 = vadd.f32 %v1455_v4, %v1454_v60  ;;  %v1467_v13 = vrot.slane %v1466_v5, 1  ;;  %v1471_v14 = vrot.slane %v1470_v6, 2  ;;  %v1477_v15 = vrot.slane %v1476_v7, 2 }
  0xb7   :  { %v1462_v16 = vadd.f32 %v1461_v9, %v1460_v3  ;;  %v1484_v17 = vmul.f32 0.125, %v1450_v8  ;;  %v1490_v18 = vpack.c.bf16 %v1482_v10, %v1482_v10  ;;  %v1491_v19 = vpack.c.bf16 %v1483_v11, %v1483_v11 }
  0xb8   :  { %v1468_v20 = vadd.f32 %v1467_v13, %v1466_v5  ;;  %v1472_v21 = vadd.f32 %v1471_v14, %v1470_v6  ;;  %v1478_v22 = vadd.f32 %v1477_v15, %v1476_v7  ;;  %v1485_v23 = vmul.f32 0.125, %v1456_v12 }
  0xb9   :  { %v1486_v24 = vmul.f32 0.125, %v1462_v16  ;;  %v1492_v25 = vpack.c.bf16 %v1484_v17, %v1484_v17  ;;  %v1522_v26 = vunpack.c.l.b16 %v1490_v18  ;;  %v1523_v27 = vunpack.c.l.b16 %v1491_v19 }
  0xba   :  { %v1473_v28 = vrot.slane %v1472_v21, 1  ;;  %v1479_v29 = vrot.slane %v1478_v22, 1  ;;  %v1487_v30 = vmul.f32 0.125, %v1468_v20  ;;  %v1493_v31 = vpack.c.bf16 %v1485_v23, %v1485_v23 }
  0xbb   :  { %v1494_v32 = vpack.c.bf16 %v1486_v24, %v1486_v24  ;;  %v1524_v33 = vunpack.c.l.b16 %v1492_v25  ;;  %v1530_v34 = vsel %vm949_vm1, %v1523_v27, %v1522_v26 }
  0xbc   :  { %v1474_v35 = vadd.f32 %v1473_v28, %v1472_v21  ;;  %v1480_v36 = vadd.f32 %v1479_v29, %v1478_v22  ;;  %v1495_v37 = vpack.c.bf16 %v1487_v30, %v1487_v30  ;;  %v1525_v38 = vunpack.c.l.b16 %v1493_v31 }
  0xbd   :  { %v1526_v39 = vunpack.c.l.b16 %v1494_v32  ;;  %v1531_v40 = vsel %vm951_vm2, %v1524_v33, %v1530_v34 }
  0xbe   :  { %v1488_v41 = vmul.f32 0.125, %v1474_v35  ;;  %v1489_v42 = vmul.f32 0.125, %v1480_v36  ;;  %v1527_v43 = vunpack.c.l.b16 %v1495_v37  ;;  %v1532_v44 = vsel %vm953_vm3, %v1525_v38, %v1531_v40 }
  0xbf   :  { %v1533_v45 = vsel %vm955_vm4, %v1526_v39, %v1532_v44 }
  0xc0   :  { %v1496_v0 = vpack.c.bf16 %v1488_v41, %v1488_v41  ;;  %v1497_v46 = vpack.c.bf16 %v1489_v42, %v1489_v42  ;;  %v1534_v47 = vsel %vm957_vm5, %v1527_v43, %v1533_v45 }
  0xc2   :  { %v1528_v48 = vunpack.c.l.b16 %v1496_v0  ;;  %v1529_v49 = vunpack.c.l.b16 %v1497_v46 }
  0xc4   :  { %v1535_v50 = vsel %vm959_vm6, %v1528_v48, %v1534_v47 }
  0xc5   :  { %v1536_v51 = vsel %vm961_vm7, %v1529_v49, %v1535_v50 }
  0xc6   :  { %v1537_v52 = vpack.c.b16 %v1536_v51, %v1536_v51 }
  0xc8   :  { %1875 = vmatmul.mubr.bf16.vlgmr.msra.gmra.mxu0 %v1537_v52 }
  0xe1   :  { %v847_v53 = vpop.f32.mrf.mxu0 }
  0xe3   :  { %v1856_v54 = vpop.f32.mrf.mxu0 }
  0xe5   :  { %v850_v55 = vpop.f32.mrf.mxu0 }
  0xe7   :  { %v1857_v56 = vpop.f32.mrf.mxu0 }
 0x10c   :  { %v1779_v57 = vpop.f32.mrf.mxu1 }
 0x10e   :  { %v1780_v58 = vpop.f32.mrf.mxu1 }
 0x10f   :  { %v1781_v59 = vadd.f32 %v1780_v58, %v1779_v57 }
 0x110   :  { %v1782_v60 = vpop.f32.mrf.mxu1 }
 0x111   :  { %v1333_v61 = vadd.f32 %v1781_v59, %v847_v53 }
 0x112   :  { %v1783_v62 = vpop.f32.mrf.mxu1 }
 0x141   :  { %v1801_v63 = vpop.f32.mrf.mxu0 }
 0x143   :  { %v1802_v1 = vpop.f32.mrf.mxu0 }
 0x144   :  { %v1803_v4 = vadd.f32 %v1802_v1, %v1801_v63 }
 0x145   :  { %v1804_v2 = vpop.f32.mrf.mxu0 }
 0x146   :  { %v1373_v6 = vadd.f32 %v1803_v4, %v1333_v61 }
 0x147   :  { %v1805_v3 = vpop.f32.mrf.mxu0 }
 0x175   :  { %v1823_v5 = vpop.f32.mrf.mxu1 }
 0x177   :  { %v1824_v7 = vpop.f32.mrf.mxu1 }
 0x178   :  { %v1825_v8 = vadd.f32 %v1824_v7, %v1823_v5 }
 0x179   :  { %v1826_v9 = vpop.f32.mrf.mxu1 }
 0x17a   :  { %v1413_v10 = vadd.f32 %v1825_v8, %v1373_v6 }
 0x17b   :  { %v1827_v11 = vpop.f32.mrf.mxu1 }
 0x17c   :  { %v1418_v12 = vmul.f32 %v1413_v10, %v1413_v10 }
 0x17e   :  { %1419 = vadd.xlane.f32.xlu0 %v1418_v12 }
 0x188   :  { %v1621_v13 = vpop.f32.mrf.mxu0 }
 0x189   :  { %v1627_v14 = vmul.f32 %v1621_v13, %v1621_v13 }
 0x18a   :  { %v1876_v15 = vpop.f32.mrf.mxu0 }
 0x18b   :  { %1628 = vadd.xlane.f32.xlu0 %v1627_v14 }
 0x18c   :  { %v1624_v16 = vpop.f32.mrf.mxu0 }
 0x18e   :  { %v1877_v17 = vpop.f32.mrf.mxu0 }
 0x207   :  { %v1420_v18 = vpop.xlane.xlu0 %1419 }
 0x208   :  { %v1421_v19 = vmax.f32 %v1420_v18, 1e-24 }
 0x20a   :  { %1944 = vrsqrt.f32 %v1421_v19 }
 0x214   :  { %v1629_v20 = vpop.xlane.xlu0 %1628 }
 0x215   :  { %v1630_v21 = vmax.f32 %v1629_v20, 1e-24 }
 0x217   :  { %v1945_v22 = vpop.eup %1944  ;;  %1946 = vrsqrt.f32 %v1630_v21 }
 0x218   :  { %v1423_v23 = vmul.f32 %v1945_v22, %v1413_v10 }
 0x21a   :  { %1424 = vst [vmem:[%s2578_s6] sm:$0xff] %v1423_v23 }
 0x224   :  { %v1947_v24 = vpop.eup %1946 }
 0x225   :  { %v1632_v25 = vmul.f32 %v1947_v24, %v1621_v13 }
 0x227   :  { %1633 = vst [vmem:[%s2579_s7] sm:$0xff] %v1632_v25 }

</bundles_post_ra>
